<compile_context>
chip_gen: v7x
topology: tpu7x:2x2x1
jax: 0.10.0
libtpu: 0.0.40
codegen_flags: <defaults>
</compile_context>

<pallas_src>
import jax
import jax.numpy as jnp
import numpy as np
from jax.experimental import pallas as pl
from jax.experimental.pallas import tpu as pltpu

INPUT_SIZE = 2
HIDDEN = 10
HIDDEN_PAD = 128  # one full lane-width slot per gate


def lstm_fc_kernel(xg_ref, whh_ref, wfc_ref, bfc_ref, o_ref, hs_ref):
    """xg_ref:  (S, B, 4*HP)  precomputed x@W_ih^T + bias, gate-slot padded
       whh_ref: (HP, 4*HP)    W_hh^T, gate-slot padded
       wfc_ref: (1, HP)       fc weight, lane padded
       bfc_ref: (1,)          fc bias (SMEM scalar)
       o_ref:   (S, B, 1)     output
       hs_ref:  (S, B, HP)    VMEM scratch collecting hidden states
    """
    S, B, _ = xg_ref.shape
    HP = HIDDEN_PAD

    whh = whh_ref[...]                                   # hoisted weight load
    h0 = jnp.zeros((B, HP), jnp.float32)
    c0 = jnp.zeros((B, HP), jnp.float32)

    def step(t, carry):
        h, c = carry
        # One matmul per recurrent step; input projection + bias precomputed.
        gates = xg_ref[t] + jnp.dot(h, whh, preferred_element_type=jnp.float32)
        # Gate order i, f, g, o — each in its own 128-lane aligned slot.
        i_g = jax.nn.sigmoid(gates[:, 0 * HP:1 * HP])
        f_g = jax.nn.sigmoid(gates[:, 1 * HP:2 * HP])
        g_g = jnp.tanh(gates[:, 2 * HP:3 * HP])
        o_g = jax.nn.sigmoid(gates[:, 3 * HP:4 * HP])
        c_new = f_g * c + i_g * g_g
        h_new = o_g * jnp.tanh(c_new)
        hs_ref[t] = h_new
        return (h_new, c_new)

    jax.lax.fori_loop(0, S, step, (h0, c0), unroll=True)

    # Batched fc for all timesteps at once (off the serial critical path):
    # out[s, b] = sum_h hs[s, b, h] * w_fc[h] + b_fc   (padded lanes are 0).
    hs = hs_ref[...]                                      # (S, B, HP)
    out = jnp.sum(hs * wfc_ref[...], axis=-1, keepdims=True)   # (S, B, 1)
    o_ref[...] = out + bfc_ref[0]


def _pad_gate_weights(w_ih, w_hh, b_ih, b_hh):
    """Re-layout PyTorch-shaped LSTM weights so each gate owns an aligned
    128-lane slot. Returns W_ih^T (I, 4*HP), W_hh^T (HP, 4*HP), bias (4*HP,)."""
    H, I, HP = HIDDEN, INPUT_SIZE, HIDDEN_PAD
    wih_pad = jnp.zeros((I, 4 * HP), jnp.float32)
    whh_pad = jnp.zeros((HP, 4 * HP), jnp.float32)
    bias_pad = jnp.zeros((4 * HP,), jnp.float32)
    b = (b_ih + b_hh).astype(jnp.float32)
    for g in range(4):                                    # gate order: i, f, g, o
        wih_pad = wih_pad.at[:, g * HP:g * HP + H].set(w_ih[g * H:(g + 1) * H, :].T)
        whh_pad = whh_pad.at[:H, g * HP:g * HP + H].set(w_hh[g * H:(g + 1) * H, :].T)
        bias_pad = bias_pad.at[g * HP:g * HP + H].set(b[g * H:(g + 1) * H])
    return wih_pad, whh_pad, bias_pad


def lstm_fc_forward(x, params):
    """x: (S, B, INPUT_SIZE) float32 -> (S, B, 1) float32."""
    S, B, I = x.shape
    H, HP = HIDDEN, HIDDEN_PAD
    w_ih, w_hh, b_ih, b_hh, w_fc, b_fc = params

    wih_pad, whh_pad, bias_pad = _pad_gate_weights(w_ih, w_hh, b_ih, b_hh)
    wfc_pad = jnp.zeros((1, HP), jnp.float32).at[0, :H].set(w_fc[0])
    bfc = b_fc.reshape(1).astype(jnp.float32)

    # Precompute the input projection + fused LSTM bias for all timesteps in
    # one matmul (keeps only h @ W_hh^T inside the recurrent loop).
    xg = jnp.einsum('sbi,ig->sbg', x.astype(jnp.float32), wih_pad,
                    precision=jax.lax.Precision.HIGHEST) + bias_pad   # (S, B, 4*HP)

    return pl.pallas_call(
        lstm_fc_kernel,
        out_shape=jax.ShapeDtypeStruct((S, B, 1), jnp.float32),
        in_specs=[
            pl.BlockSpec(memory_space=pltpu.MemorySpace.VMEM),   # xg
            pl.BlockSpec(memory_space=pltpu.MemorySpace.VMEM),   # W_hh^T padded
            pl.BlockSpec(memory_space=pltpu.MemorySpace.VMEM),   # fc weight padded
            pl.BlockSpec(memory_space=pltpu.MemorySpace.SMEM),   # fc bias scalar
        ],
        out_specs=pl.BlockSpec(memory_space=pltpu.MemorySpace.VMEM),
        scratch_shapes=[pltpu.VMEM((S, B, HP), jnp.float32)],    # hidden states
    )(xg, whh_pad, wfc_pad, bfc)


def init_params(key):
    """Deterministic init matching PyTorch shapes (uniform +-1/sqrt(H))."""
    H, I = HIDDEN, INPUT_SIZE
    k = 1.0 / np.sqrt(H)
    ks = jax.random.split(key, 6)
    w_ih = jax.random.uniform(ks[0], (4 * H, I), jnp.float32, -k, k)
    w_hh = jax.random.uniform(ks[1], (4 * H, H), jnp.float32, -k, k)
    b_ih = jax.random.uniform(ks[2], (4 * H,), jnp.float32, -k, k)
    b_hh = jax.random.uniform(ks[3], (4 * H,), jnp.float32, -k, k)
    w_fc = jax.random.uniform(ks[4], (1, H), jnp.float32, -k, k)
    b_fc = jax.random.uniform(ks[5], (1,), jnp.float32, -k, k)
    return (w_ih, w_hh, b_ih, b_hh, w_fc, b_fc)


def reference_forward(x, params):
    """Pure-JAX reference of the PyTorch module forward."""
    w_ih, w_hh, b_ih, b_hh, w_fc, b_fc = params
    S, B, _ = x.shape
    H = HIDDEN

    def step(carry, x_t):
        h, c = carry
        gates = x_t @ w_ih.T + h @ w_hh.T + b_ih + b_hh
        i = jax.nn.sigmoid(gates[:, 0 * H:1 * H])
        f = jax.nn.sigmoid(gates[:, 1 * H:2 * H])
        g = jnp.tanh(gates[:, 2 * H:3 * H])
        o = jax.nn.sigmoid(gates[:, 3 * H:4 * H])
        c = f * c + i * g
        h = o * jnp.tanh(c)
        return (h, c), h

    h0 = jnp.zeros((B, H), jnp.float32)
    c0 = jnp.zeros((B, H), jnp.float32)
    _, hs = jax.lax.scan(step, (h0, c0), x)          # (S, B, H)
    out = hs.reshape(-1, H) @ w_fc.T + b_fc          # (S*B, 1)
    return out.reshape(S, B, 1)


if __name__ == "__main__":
    key = jax.random.PRNGKey(0)
    k_param, k_x = jax.random.split(key)
    params = init_params(k_param)

    S, B = 8, 2
    x = jax.random.normal(k_x, (S, B, INPUT_SIZE), jnp.float32)

    fwd = jax.jit(lstm_fc_forward)
    out = jax.block_until_ready(fwd(x, params))
    ref = jax.block_until_ready(reference_forward(x, params))

    assert out.shape == (S, B, 1), out.shape
    np.testing.assert_allclose(np.asarray(out), np.asarray(ref),
                               rtol=1e-5, atol=1e-5)
    print("KERNEL_OK")
</pallas_src>

<mosaic_0001>
module attributes {stable_mosaic.version = 11 : i64} {
  func.func @lstm_fc_kernel(%arg0: memref<8x2x512xf32, #tpu.memory_space<vmem>>, %arg1: memref<128x512xf32, #tpu.memory_space<vmem>>, %arg2: memref<1x128xf32, #tpu.memory_space<vmem>>, %arg3: memref<1xf32, #tpu.memory_space<smem>>, %arg4: memref<8x2x1xf32, #tpu.memory_space<vmem>>, %arg5: memref<8x2x128xf32, #tpu.memory_space<vmem>>) attributes {dimension_semantics = [], scalar_prefetch = 0 : i64, scratch_operands = 1 : i64, tpu.core_type = #tpu.core_type<tc>} {
    %c0 = arith.constant 0 : index
    %c0_0 = arith.constant 0 : index
    %0 = vector.load %arg1[%c0, %c0_0] : memref<128x512xf32, #tpu.memory_space<vmem>>, vector<128x512xf32>
    %cst = arith.constant 0.000000e+00 : f32
    %1 = vector.broadcast %cst : f32 to vector<2x128xf32>
    %cst_1 = arith.constant 0.000000e+00 : f32
    %2 = vector.broadcast %cst_1 : f32 to vector<2x128xf32>
    %c0_i32 = arith.constant 0 : i32
    %3 = arith.index_cast %c0_i32 : i32 to index
    %c0_2 = arith.constant 0 : index
    %c0_3 = arith.constant 0 : index
    %4 = vector.load %arg0[%3, %c0_2, %c0_3] : memref<8x2x512xf32, #tpu.memory_space<vmem>>, vector<1x2x512xf32>
    %5 = vector.shape_cast %4 : vector<1x2x512xf32> to vector<2x512xf32>
    %cst_4 = arith.constant dense<0.000000e+00> : vector<2x512xf32>
    %6 = tpu.matmul %1, %0, %cst_4 {dimension_numbers = #tpu.dot_dimension_numbers<[1], [0], [0], [1], [0, 0, 1, 1], [], []>} : vector<2x128xf32>, vector<128x512xf32>, vector<2x512xf32> -> vector<2x512xf32>
    %7 = arith.addf %5, %6 : vector<2x512xf32>
    %8 = vector.extract_strided_slice %7 {offsets = [0, 0], sizes = [2, 128], strides = [1, 1]} : vector<2x512xf32> to vector<2x128xf32>
    %9 = arith.negf %8 : vector<2x128xf32>
    %10 = math.exp %9 : vector<2x128xf32>
    %cst_5 = arith.constant 1.000000e+00 : f32
    %11 = vector.broadcast %cst_5 : f32 to vector<2x128xf32>
    %12 = arith.addf %11, %10 : vector<2x128xf32>
    %13 = arith.divf %11, %12 : vector<2x128xf32>
    %14 = vector.extract_strided_slice %7 {offsets = [0, 128], sizes = [2, 128], strides = [1, 1]} : vector<2x512xf32> to vector<2x128xf32>
    %15 = arith.negf %14 : vector<2x128xf32>
    %16 = math.exp %15 : vector<2x128xf32>
    %cst_6 = arith.constant 1.000000e+00 : f32
    %17 = vector.broadcast %cst_6 : f32 to vector<2x128xf32>
    %18 = arith.addf %17, %16 : vector<2x128xf32>
    %19 = arith.divf %17, %18 : vector<2x128xf32>
    %20 = vector.extract_strided_slice %7 {offsets = [0, 256], sizes = [2, 128], strides = [1, 1]} : vector<2x512xf32> to vector<2x128xf32>
    %21 = math.tanh %20 : vector<2x128xf32>
    %22 = vector.extract_strided_slice %7 {offsets = [0, 384], sizes = [2, 128], strides = [1, 1]} : vector<2x512xf32> to vector<2x128xf32>
    %23 = arith.negf %22 : vector<2x128xf32>
    %24 = math.exp %23 : vector<2x128xf32>
    %cst_7 = arith.constant 1.000000e+00 : f32
    %25 = vector.broadcast %cst_7 : f32 to vector<2x128xf32>
    %26 = arith.addf %25, %24 : vector<2x128xf32>
    %27 = arith.divf %25, %26 : vector<2x128xf32>
    %28 = arith.mulf %19, %2 : vector<2x128xf32>
    %29 = arith.mulf %13, %21 : vector<2x128xf32>
    %30 = arith.addf %28, %29 : vector<2x128xf32>
    %31 = math.tanh %30 : vector<2x128xf32>
    %32 = arith.mulf %27, %31 : vector<2x128xf32>
    %33 = arith.index_cast %c0_i32 : i32 to index
    %c0_8 = arith.constant 0 : index
    %c0_9 = arith.constant 0 : index
    %34 = vector.load %arg5[%33, %c0_8, %c0_9] : memref<8x2x128xf32, #tpu.memory_space<vmem>>, vector<1x2x128xf32>
    %35 = vector.shape_cast %34 : vector<1x2x128xf32> to vector<2x128xf32>
    %36 = vector.shape_cast %32 : vector<2x128xf32> to vector<1x2x128xf32>
    tpu.vector_store %arg5[%33, %c0_8, %c0_9], %36 {strides = array<i32>} : memref<8x2x128xf32, #tpu.memory_space<vmem>>, vector<1x2x128xf32>,
    %c1_i32 = arith.constant 1 : i32
    %37 = arith.index_cast %c1_i32 : i32 to index
    %c0_10 = arith.constant 0 : index
    %c0_11 = arith.constant 0 : index
    %38 = vector.load %arg0[%37, %c0_10, %c0_11] : memref<8x2x512xf32, #tpu.memory_space<vmem>>, vector<1x2x512xf32>
    %39 = vector.shape_cast %38 : vector<1x2x512xf32> to vector<2x512xf32>
    %cst_12 = arith.constant dense<0.000000e+00> : vector<2x512xf32>
    %40 = tpu.matmul %32, %0, %cst_12 {dimension_numbers = #tpu.dot_dimension_numbers<[1], [0], [0], [1], [0, 0, 1, 1], [], []>} : vector<2x128xf32>, vector<128x512xf32>, vector<2x512xf32> -> vector<2x512xf32>
    %41 = arith.addf %39, %40 : vector<2x512xf32>
    %42 = vector.extract_strided_slice %41 {offsets = [0, 0], sizes = [2, 128], strides = [1, 1]} : vector<2x512xf32> to vector<2x128xf32>
    %43 = arith.negf %42 : vector<2x128xf32>
    %44 = math.exp %43 : vector<2x128xf32>
    %cst_13 = arith.constant 1.000000e+00 : f32
    %45 = vector.broadcast %cst_13 : f32 to vector<2x128xf32>
    %46 = arith.addf %45, %44 : vector<2x128xf32>
    %47 = arith.divf %45, %46 : vector<2x128xf32>
    %48 = vector.extract_strided_slice %41 {offsets = [0, 128], sizes = [2, 128], strides = [1, 1]} : vector<2x512xf32> to vector<2x128xf32>
    %49 = arith.negf %48 : vector<2x128xf32>
    %50 = math.exp %49 : vector<2x128xf32>
    %cst_14 = arith.constant 1.000000e+00 : f32
    %51 = vector.broadcast %cst_14 : f32 to vector<2x128xf32>
    %52 = arith.addf %51, %50 : vector<2x128xf32>
    %53 = arith.divf %51, %52 : vector<2x128xf32>
    %54 = vector.extract_strided_slice %41 {offsets = [0, 256], sizes = [2, 128], strides = [1, 1]} : vector<2x512xf32> to vector<2x128xf32>
    %55 = math.tanh %54 : vector<2x128xf32>
    %56 = vector.extract_strided_slice %41 {offsets = [0, 384], sizes = [2, 128], strides = [1, 1]} : vector<2x512xf32> to vector<2x128xf32>
    %57 = arith.negf %56 : vector<2x128xf32>
    %58 = math.exp %57 : vector<2x128xf32>
    %cst_15 = arith.constant 1.000000e+00 : f32
    %59 = vector.broadcast %cst_15 : f32 to vector<2x128xf32>
    %60 = arith.addf %59, %58 : vector<2x128xf32>
    %61 = arith.divf %59, %60 : vector<2x128xf32>
    %62 = arith.mulf %53, %30 : vector<2x128xf32>
    %63 = arith.mulf %47, %55 : vector<2x128xf32>
    %64 = arith.addf %62, %63 : vector<2x128xf32>
    %65 = math.tanh %64 : vector<2x128xf32>
    %66 = arith.mulf %61, %65 : vector<2x128xf32>
    %67 = arith.index_cast %c1_i32 : i32 to index
    %c0_16 = arith.constant 0 : index
    %c0_17 = arith.constant 0 : index
    %68 = vector.load %arg5[%67, %c0_16, %c0_17] : memref<8x2x128xf32, #tpu.memory_space<vmem>>, vector<1x2x128xf32>
    %69 = vector.shape_cast %68 : vector<1x2x128xf32> to vector<2x128xf32>
    %70 = vector.shape_cast %66 : vector<2x128xf32> to vector<1x2x128xf32>
    tpu.vector_store %arg5[%67, %c0_16, %c0_17], %70 {strides = array<i32>} : memref<8x2x128xf32, #tpu.memory_space<vmem>>, vector<1x2x128xf32>,
    %c2_i32 = arith.constant 2 : i32
    %71 = arith.index_cast %c2_i32 : i32 to index
    %c0_18 = arith.constant 0 : index
    %c0_19 = arith.constant 0 : index
    %72 = vector.load %arg0[%71, %c0_18, %c0_19] : memref<8x2x512xf32, #tpu.memory_space<vmem>>, vector<1x2x512xf32>
    %73 = vector.shape_cast %72 : vector<1x2x512xf32> to vector<2x512xf32>
    %cst_20 = arith.constant dense<0.000000e+00> : vector<2x512xf32>
    %74 = tpu.matmul %66, %0, %cst_20 {dimension_numbers = #tpu.dot_dimension_numbers<[1], [0], [0], [1], [0, 0, 1, 1], [], []>} : vector<2x128xf32>, vector<128x512xf32>, vector<2x512xf32> -> vector<2x512xf32>
    %75 = arith.addf %73, %74 : vector<2x512xf32>
    %76 = vector.extract_strided_slice %75 {offsets = [0, 0], sizes = [2, 128], strides = [1, 1]} : vector<2x512xf32> to vector<2x128xf32>
    %77 = arith.negf %76 : vector<2x128xf32>
    %78 = math.exp %77 : vector<2x128xf32>
    %cst_21 = arith.constant 1.000000e+00 : f32
    %79 = vector.broadcast %cst_21 : f32 to vector<2x128xf32>
    %80 = arith.addf %79, %78 : vector<2x128xf32>
    %81 = arith.divf %79, %80 : vector<2x128xf32>
    %82 = vector.extract_strided_slice %75 {offsets = [0, 128], sizes = [2, 128], strides = [1, 1]} : vector<2x512xf32> to vector<2x128xf32>
    %83 = arith.negf %82 : vector<2x128xf32>
    %84 = math.exp %83 : vector<2x128xf32>
    %cst_22 = arith.constant 1.000000e+00 : f32
    %85 = vector.broadcast %cst_22 : f32 to vector<2x128xf32>
    %86 = arith.addf %85, %84 : vector<2x128xf32>
    %87 = arith.divf %85, %86 : vector<2x128xf32>
    %88 = vector.extract_strided_slice %75 {offsets = [0, 256], sizes = [2, 128], strides = [1, 1]} : vector<2x512xf32> to vector<2x128xf32>
    %89 = math.tanh %88 : vector<2x128xf32>
    %90 = vector.extract_strided_slice %75 {offsets = [0, 384], sizes = [2, 128], strides = [1, 1]} : vector<2x512xf32> to vector<2x128xf32>
    %91 = arith.negf %90 : vector<2x128xf32>
    %92 = math.exp %91 : vector<2x128xf32>
    %cst_23 = arith.constant 1.000000e+00 : f32
    %93 = vector.broadcast %cst_23 : f32 to vector<2x128xf32>
    %94 = arith.addf %93, %92 : vector<2x128xf32>
    %95 = arith.divf %93, %94 : vector<2x128xf32>
    %96 = arith.mulf %87, %64 : vector<2x128xf32>
    %97 = arith.mulf %81, %89 : vector<2x128xf32>
    %98 = arith.addf %96, %97 : vector<2x128xf32>
    %99 = math.tanh %98 : vector<2x128xf32>
    %100 = arith.mulf %95, %99 : vector<2x128xf32>
    %101 = arith.index_cast %c2_i32 : i32 to index
    %c0_24 = arith.constant 0 : index
    %c0_25 = arith.constant 0 : index
    %102 = vector.load %arg5[%101, %c0_24, %c0_25] : memref<8x2x128xf32, #tpu.memory_space<vmem>>, vector<1x2x128xf32>
    %103 = vector.shape_cast %102 : vector<1x2x128xf32> to vector<2x128xf32>
    %104 = vector.shape_cast %100 : vector<2x128xf32> to vector<1x2x128xf32>
    tpu.vector_store %arg5[%101, %c0_24, %c0_25], %104 {strides = array<i32>} : memref<8x2x128xf32, #tpu.memory_space<vmem>>, vector<1x2x128xf32>,
    %c3_i32 = arith.constant 3 : i32
    %105 = arith.index_cast %c3_i32 : i32 to index
    %c0_26 = arith.constant 0 : index
    %c0_27 = arith.constant 0 : index
    %106 = vector.load %arg0[%105, %c0_26, %c0_27] : memref<8x2x512xf32, #tpu.memory_space<vmem>>, vector<1x2x512xf32>
    %107 = vector.shape_cast %106 : vector<1x2x512xf32> to vector<2x512xf32>
    %cst_28 = arith.constant dense<0.000000e+00> : vector<2x512xf32>
    %108 = tpu.matmul %100, %0, %cst_28 {dimension_numbers = #tpu.dot_dimension_numbers<[1], [0], [0], [1], [0, 0, 1, 1], [], []>} : vector<2x128xf32>, vector<128x512xf32>, vector<2x512xf32> -> vector<2x512xf32>
    %109 = arith.addf %107, %108 : vector<2x512xf32>
    %110 = vector.extract_strided_slice %109 {offsets = [0, 0], sizes = [2, 128], strides = [1, 1]} : vector<2x512xf32> to vector<2x128xf32>
    %111 = arith.negf %110 : vector<2x128xf32>
    %112 = math.exp %111 : vector<2x128xf32>
    %cst_29 = arith.constant 1.000000e+00 : f32
    %113 = vector.broadcast %cst_29 : f32 to vector<2x128xf32>
    %114 = arith.addf %113, %112 : vector<2x128xf32>
    %115 = arith.divf %113, %114 : vector<2x128xf32>
    %116 = vector.extract_strided_slice %109 {offsets = [0, 128], sizes = [2, 128], strides = [1, 1]} : vector<2x512xf32> to vector<2x128xf32>
    %117 = arith.negf %116 : vector<2x128xf32>
    %118 = math.exp %117 : vector<2x128xf32>
    %cst_30 = arith.constant 1.000000e+00 : f32
    %119 = vector.broadcast %cst_30 : f32 to vector<2x128xf32>
    %120 = arith.addf %119, %118 : vector<2x128xf32>
    %121 = arith.divf %119, %120 : vector<2x128xf32>
    %122 = vector.extract_strided_slice %109 {offsets = [0, 256], sizes = [2, 128], strides = [1, 1]} : vector<2x512xf32> to vector<2x128xf32>
    %123 = math.tanh %122 : vector<2x128xf32>
    %124 = vector.extract_strided_slice %109 {offsets = [0, 384], sizes = [2, 128], strides = [1, 1]} : vector<2x512xf32> to vector<2x128xf32>
    %125 = arith.negf %124 : vector<2x128xf32>
    %126 = math.exp %125 : vector<2x128xf32>
    %cst_31 = arith.constant 1.000000e+00 : f32
    %127 = vector.broadcast %cst_31 : f32 to vector<2x128xf32>
    %128 = arith.addf %127, %126 : vector<2x128xf32>
    %129 = arith.divf %127, %128 : vector<2x128xf32>
    %130 = arith.mulf %121, %98 : vector<2x128xf32>
    %131 = arith.mulf %115, %123 : vector<2x128xf32>
    %132 = arith.addf %130, %131 : vector<2x128xf32>
    %133 = math.tanh %132 : vector<2x128xf32>
    %134 = arith.mulf %129, %133 : vector<2x128xf32>
    %135 = arith.index_cast %c3_i32 : i32 to index
    %c0_32 = arith.constant 0 : index
    %c0_33 = arith.constant 0 : index
    %136 = vector.load %arg5[%135, %c0_32, %c0_33] : memref<8x2x128xf32, #tpu.memory_space<vmem>>, vector<1x2x128xf32>
    %137 = vector.shape_cast %136 : vector<1x2x128xf32> to vector<2x128xf32>
    %138 = vector.shape_cast %134 : vector<2x128xf32> to vector<1x2x128xf32>
    tpu.vector_store %arg5[%135, %c0_32, %c0_33], %138 {strides = array<i32>} : memref<8x2x128xf32, #tpu.memory_space<vmem>>, vector<1x2x128xf32>,
    %c4_i32 = arith.constant 4 : i32
    %139 = arith.index_cast %c4_i32 : i32 to index
    %c0_34 = arith.constant 0 : index
    %c0_35 = arith.constant 0 : index
    %140 = vector.load %arg0[%139, %c0_34, %c0_35] : memref<8x2x512xf32, #tpu.memory_space<vmem>>, vector<1x2x512xf32>
    %141 = vector.shape_cast %140 : vector<1x2x512xf32> to vector<2x512xf32>
    %cst_36 = arith.constant dense<0.000000e+00> : vector<2x512xf32>
    %142 = tpu.matmul %134, %0, %cst_36 {dimension_numbers = #tpu.dot_dimension_numbers<[1], [0], [0], [1], [0, 0, 1, 1], [], []>} : vector<2x128xf32>, vector<128x512xf32>, vector<2x512xf32> -> vector<2x512xf32>
    %143 = arith.addf %141, %142 : vector<2x512xf32>
    %144 = vector.extract_strided_slice %143 {offsets = [0, 0], sizes = [2, 128], strides = [1, 1]} : vector<2x512xf32> to vector<2x128xf32>
    %145 = arith.negf %144 : vector<2x128xf32>
    %146 = math.exp %145 : vector<2x128xf32>
    %cst_37 = arith.constant 1.000000e+00 : f32
    %147 = vector.broadcast %cst_37 : f32 to vector<2x128xf32>
    %148 = arith.addf %147, %146 : vector<2x128xf32>
    %149 = arith.divf %147, %148 : vector<2x128xf32>
    %150 = vector.extract_strided_slice %143 {offsets = [0, 128], sizes = [2, 128], strides = [1, 1]} : vector<2x512xf32> to vector<2x128xf32>
    %151 = arith.negf %150 : vector<2x128xf32>
    %152 = math.exp %151 : vector<2x128xf32>
    %cst_38 = arith.constant 1.000000e+00 : f32
    %153 = vector.broadcast %cst_38 : f32 to vector<2x128xf32>
    %154 = arith.addf %153, %152 : vector<2x128xf32>
    %155 = arith.divf %153, %154 : vector<2x128xf32>
    %156 = vector.extract_strided_slice %143 {offsets = [0, 256], sizes = [2, 128], strides = [1, 1]} : vector<2x512xf32> to vector<2x128xf32>
    %157 = math.tanh %156 : vector<2x128xf32>
    %158 = vector.extract_strided_slice %143 {offsets = [0, 384], sizes = [2, 128], strides = [1, 1]} : vector<2x512xf32> to vector<2x128xf32>
    %159 = arith.negf %158 : vector<2x128xf32>
    %160 = math.exp %159 : vector<2x128xf32>
    %cst_39 = arith.constant 1.000000e+00 : f32
    %161 = vector.broadcast %cst_39 : f32 to vector<2x128xf32>
    %162 = arith.addf %161, %160 : vector<2x128xf32>
    %163 = arith.divf %161, %162 : vector<2x128xf32>
    %164 = arith.mulf %155, %132 : vector<2x128xf32>
    %165 = arith.mulf %149, %157 : vector<2x128xf32>
    %166 = arith.addf %164, %165 : vector<2x128xf32>
    %167 = math.tanh %166 : vector<2x128xf32>
    %168 = arith.mulf %163, %167 : vector<2x128xf32>
    %169 = arith.index_cast %c4_i32 : i32 to index
    %c0_40 = arith.constant 0 : index
    %c0_41 = arith.constant 0 : index
    %170 = vector.load %arg5[%169, %c0_40, %c0_41] : memref<8x2x128xf32, #tpu.memory_space<vmem>>, vector<1x2x128xf32>
    %171 = vector.shape_cast %170 : vector<1x2x128xf32> to vector<2x128xf32>
    %172 = vector.shape_cast %168 : vector<2x128xf32> to vector<1x2x128xf32>
    tpu.vector_store %arg5[%169, %c0_40, %c0_41], %172 {strides = array<i32>} : memref<8x2x128xf32, #tpu.memory_space<vmem>>, vector<1x2x128xf32>,
    %c5_i32 = arith.constant 5 : i32
    %173 = arith.index_cast %c5_i32 : i32 to index
    %c0_42 = arith.constant 0 : index
    %c0_43 = arith.constant 0 : index
    %174 = vector.load %arg0[%173, %c0_42, %c0_43] : memref<8x2x512xf32, #tpu.memory_space<vmem>>, vector<1x2x512xf32>
    %175 = vector.shape_cast %174 : vector<1x2x512xf32> to vector<2x512xf32>
    %cst_44 = arith.constant dense<0.000000e+00> : vector<2x512xf32>
    %176 = tpu.matmul %168, %0, %cst_44 {dimension_numbers = #tpu.dot_dimension_numbers<[1], [0], [0], [1], [0, 0, 1, 1], [], []>} : vector<2x128xf32>, vector<128x512xf32>, vector<2x512xf32> -> vector<2x512xf32>
    %177 = arith.addf %175, %176 : vector<2x512xf32>
    %178 = vector.extract_strided_slice %177 {offsets = [0, 0], sizes = [2, 128], strides = [1, 1]} : vector<2x512xf32> to vector<2x128xf32>
    %179 = arith.negf %178 : vector<2x128xf32>
    %180 = math.exp %179 : vector<2x128xf32>
    %cst_45 = arith.constant 1.000000e+00 : f32
    %181 = vector.broadcast %cst_45 : f32 to vector<2x128xf32>
    %182 = arith.addf %181, %180 : vector<2x128xf32>
    %183 = arith.divf %181, %182 : vector<2x128xf32>
    %184 = vector.extract_strided_slice %177 {offsets = [0, 128], sizes = [2, 128], strides = [1, 1]} : vector<2x512xf32> to vector<2x128xf32>
    %185 = arith.negf %184 : vector<2x128xf32>
    %186 = math.exp %185 : vector<2x128xf32>
    %cst_46 = arith.constant 1.000000e+00 : f32
    %187 = vector.broadcast %cst_46 : f32 to vector<2x128xf32>
    %188 = arith.addf %187, %186 : vector<2x128xf32>
    %189 = arith.divf %187, %188 : vector<2x128xf32>
    %190 = vector.extract_strided_slice %177 {offsets = [0, 256], sizes = [2, 128], strides = [1, 1]} : vector<2x512xf32> to vector<2x128xf32>
    %191 = math.tanh %190 : vector<2x128xf32>
    %192 = vector.extract_strided_slice %177 {offsets = [0, 384], sizes = [2, 128], strides = [1, 1]} : vector<2x512xf32> to vector<2x128xf32>
    %193 = arith.negf %192 : vector<2x128xf32>
    %194 = math.exp %193 : vector<2x128xf32>
    %cst_47 = arith.constant 1.000000e+00 : f32
    %195 = vector.broadcast %cst_47 : f32 to vector<2x128xf32>
    %196 = arith.addf %195, %194 : vector<2x128xf32>
    %197 = arith.divf %195, %196 : vector<2x128xf32>
    %198 = arith.mulf %189, %166 : vector<2x128xf32>
    %199 = arith.mulf %183, %191 : vector<2x128xf32>
    %200 = arith.addf %198, %199 : vector<2x128xf32>
    %201 = math.tanh %200 : vector<2x128xf32>
    %202 = arith.mulf %197, %201 : vector<2x128xf32>
    %203 = arith.index_cast %c5_i32 : i32 to index
    %c0_48 = arith.constant 0 : index
    %c0_49 = arith.constant 0 : index
    %204 = vector.load %arg5[%203, %c0_48, %c0_49] : memref<8x2x128xf32, #tpu.memory_space<vmem>>, vector<1x2x128xf32>
    %205 = vector.shape_cast %204 : vector<1x2x128xf32> to vector<2x128xf32>
    %206 = vector.shape_cast %202 : vector<2x128xf32> to vector<1x2x128xf32>
    tpu.vector_store %arg5[%203, %c0_48, %c0_49], %206 {strides = array<i32>} : memref<8x2x128xf32, #tpu.memory_space<vmem>>, vector<1x2x128xf32>,
    %c6_i32 = arith.constant 6 : i32
    %207 = arith.index_cast %c6_i32 : i32 to index
    %c0_50 = arith.constant 0 : index
    %c0_51 = arith.constant 0 : index
    %208 = vector.load %arg0[%207, %c0_50, %c0_51] : memref<8x2x512xf32, #tpu.memory_space<vmem>>, vector<1x2x512xf32>
    %209 = vector.shape_cast %208 : vector<1x2x512xf32> to vector<2x512xf32>
    %cst_52 = arith.constant dense<0.000000e+00> : vector<2x512xf32>
    %210 = tpu.matmul %202, %0, %cst_52 {dimension_numbers = #tpu.dot_dimension_numbers<[1], [0], [0], [1], [0, 0, 1, 1], [], []>} : vector<2x128xf32>, vector<128x512xf32>, vector<2x512xf32> -> vector<2x512xf32>
    %211 = arith.addf %209, %210 : vector<2x512xf32>
    %212 = vector.extract_strided_slice %211 {offsets = [0, 0], sizes = [2, 128], strides = [1, 1]} : vector<2x512xf32> to vector<2x128xf32>
    %213 = arith.negf %212 : vector<2x128xf32>
    %214 = math.exp %213 : vector<2x128xf32>
    %cst_53 = arith.constant 1.000000e+00 : f32
    %215 = vector.broadcast %cst_53 : f32 to vector<2x128xf32>
    %216 = arith.addf %215, %214 : vector<2x128xf32>
    %217 = arith.divf %215, %216 : vector<2x128xf32>
    %218 = vector.extract_strided_slice %211 {offsets = [0, 128], sizes = [2, 128], strides = [1, 1]} : vector<2x512xf32> to vector<2x128xf32>
    %219 = arith.negf %218 : vector<2x128xf32>
    %220 = math.exp %219 : vector<2x128xf32>
    %cst_54 = arith.constant 1.000000e+00 : f32
    %221 = vector.broadcast %cst_54 : f32 to vector<2x128xf32>
    %222 = arith.addf %221, %220 : vector<2x128xf32>
    %223 = arith.divf %221, %222 : vector<2x128xf32>
    %224 = vector.extract_strided_slice %211 {offsets = [0, 256], sizes = [2, 128], strides = [1, 1]} : vector<2x512xf32> to vector<2x128xf32>
    %225 = math.tanh %224 : vector<2x128xf32>
    %226 = vector.extract_strided_slice %211 {offsets = [0, 384], sizes = [2, 128], strides = [1, 1]} : vector<2x512xf32> to vector<2x128xf32>
    %227 = arith.negf %226 : vector<2x128xf32>
    %228 = math.exp %227 : vector<2x128xf32>
    %cst_55 = arith.constant 1.000000e+00 : f32
    %229 = vector.broadcast %cst_55 : f32 to vector<2x128xf32>
    %230 = arith.addf %229, %228 : vector<2x128xf32>
    %231 = arith.divf %229, %230 : vector<2x128xf32>
    %232 = arith.mulf %223, %200 : vector<2x128xf32>
    %233 = arith.mulf %217, %225 : vector<2x128xf32>
    %234 = arith.addf %232, %233 : vector<2x128xf32>
    %235 = math.tanh %234 : vector<2x128xf32>
    %236 = arith.mulf %231, %235 : vector<2x128xf32>
    %237 = arith.index_cast %c6_i32 : i32 to index
    %c0_56 = arith.constant 0 : index
    %c0_57 = arith.constant 0 : index
    %238 = vector.load %arg5[%237, %c0_56, %c0_57] : memref<8x2x128xf32, #tpu.memory_space<vmem>>, vector<1x2x128xf32>
    %239 = vector.shape_cast %238 : vector<1x2x128xf32> to vector<2x128xf32>
    %240 = vector.shape_cast %236 : vector<2x128xf32> to vector<1x2x128xf32>
    tpu.vector_store %arg5[%237, %c0_56, %c0_57], %240 {strides = array<i32>} : memref<8x2x128xf32, #tpu.memory_space<vmem>>, vector<1x2x128xf32>,
    %c7_i32 = arith.constant 7 : i32
    %241 = arith.index_cast %c7_i32 : i32 to index
    %c0_58 = arith.constant 0 : index
    %c0_59 = arith.constant 0 : index
    %242 = vector.load %arg0[%241, %c0_58, %c0_59] : memref<8x2x512xf32, #tpu.memory_space<vmem>>, vector<1x2x512xf32>
    %243 = vector.shape_cast %242 : vector<1x2x512xf32> to vector<2x512xf32>
    %cst_60 = arith.constant dense<0.000000e+00> : vector<2x512xf32>
    %244 = tpu.matmul %236, %0, %cst_60 {dimension_numbers = #tpu.dot_dimension_numbers<[1], [0], [0], [1], [0, 0, 1, 1], [], []>} : vector<2x128xf32>, vector<128x512xf32>, vector<2x512xf32> -> vector<2x512xf32>
    %245 = arith.addf %243, %244 : vector<2x512xf32>
    %246 = vector.extract_strided_slice %245 {offsets = [0, 0], sizes = [2, 128], strides = [1, 1]} : vector<2x512xf32> to vector<2x128xf32>
    %247 = arith.negf %246 : vector<2x128xf32>
    %248 = math.exp %247 : vector<2x128xf32>
    %cst_61 = arith.constant 1.000000e+00 : f32
    %249 = vector.broadcast %cst_61 : f32 to vector<2x128xf32>
    %250 = arith.addf %249, %248 : vector<2x128xf32>
    %251 = arith.divf %249, %250 : vector<2x128xf32>
    %252 = vector.extract_strided_slice %245 {offsets = [0, 128], sizes = [2, 128], strides = [1, 1]} : vector<2x512xf32> to vector<2x128xf32>
    %253 = arith.negf %252 : vector<2x128xf32>
    %254 = math.exp %253 : vector<2x128xf32>
    %cst_62 = arith.constant 1.000000e+00 : f32
    %255 = vector.broadcast %cst_62 : f32 to vector<2x128xf32>
    %256 = arith.addf %255, %254 : vector<2x128xf32>
    %257 = arith.divf %255, %256 : vector<2x128xf32>
    %258 = vector.extract_strided_slice %245 {offsets = [0, 256], sizes = [2, 128], strides = [1, 1]} : vector<2x512xf32> to vector<2x128xf32>
    %259 = math.tanh %258 : vector<2x128xf32>
    %260 = vector.extract_strided_slice %245 {offsets = [0, 384], sizes = [2, 128], strides = [1, 1]} : vector<2x512xf32> to vector<2x128xf32>
    %261 = arith.negf %260 : vector<2x128xf32>
    %262 = math.exp %261 : vector<2x128xf32>
    %cst_63 = arith.constant 1.000000e+00 : f32
    %263 = vector.broadcast %cst_63 : f32 to vector<2x128xf32>
    %264 = arith.addf %263, %262 : vector<2x128xf32>
    %265 = arith.divf %263, %264 : vector<2x128xf32>
    %266 = arith.mulf %257, %234 : vector<2x128xf32>
    %267 = arith.mulf %251, %259 : vector<2x128xf32>
    %268 = arith.addf %266, %267 : vector<2x128xf32>
    %269 = math.tanh %268 : vector<2x128xf32>
    %270 = arith.mulf %265, %269 : vector<2x128xf32>
    %271 = arith.index_cast %c7_i32 : i32 to index
    %c0_64 = arith.constant 0 : index
    %c0_65 = arith.constant 0 : index
    %272 = vector.load %arg5[%271, %c0_64, %c0_65] : memref<8x2x128xf32, #tpu.memory_space<vmem>>, vector<1x2x128xf32>
    %273 = vector.shape_cast %272 : vector<1x2x128xf32> to vector<2x128xf32>
    %274 = vector.shape_cast %270 : vector<2x128xf32> to vector<1x2x128xf32>
    tpu.vector_store %arg5[%271, %c0_64, %c0_65], %274 {strides = array<i32>} : memref<8x2x128xf32, #tpu.memory_space<vmem>>, vector<1x2x128xf32>,
    %c8_i32 = arith.constant 8 : i32
    %c0_66 = arith.constant 0 : index
    %c0_67 = arith.constant 0 : index
    %c0_68 = arith.constant 0 : index
    %275 = vector.load %arg5[%c0_66, %c0_67, %c0_68] : memref<8x2x128xf32, #tpu.memory_space<vmem>>, vector<8x2x128xf32>
    %c0_69 = arith.constant 0 : index
    %c0_70 = arith.constant 0 : index
    %276 = vector.load %arg2[%c0_69, %c0_70] : memref<1x128xf32, #tpu.memory_space<vmem>>, vector<1x128xf32>
    %277 = vector.shape_cast %276 : vector<1x128xf32> to vector<1x1x128xf32>
    %278 = vector.broadcast %277 : vector<1x1x128xf32> to vector<8x2x128xf32>
    %279 = arith.mulf %275, %278 : vector<8x2x128xf32>
    %cst_71 = arith.constant dense<0.000000e+00> : vector<8x2xf32>
    %280 = vector.multi_reduction <add>, %279, %cst_71 [2] : vector<8x2x128xf32> to vector<8x2xf32>
    %281 = vector.shape_cast %280 : vector<8x2xf32> to vector<8x2x1xf32>
    %c0_72 = arith.constant 0 : index
    %282 = memref.load %arg3[%c0_72] : memref<1xf32, #tpu.memory_space<smem>>
    %283 = vector.broadcast %282 : f32 to vector<8x2x1xf32>
    %284 = arith.addf %281, %283 : vector<8x2x1xf32>
    %c0_73 = arith.constant 0 : index
    %c0_74 = arith.constant 0 : index
    %c0_75 = arith.constant 0 : index
    %285 = vector.load %arg4[%c0_73, %c0_74, %c0_75] : memref<8x2x1xf32, #tpu.memory_space<vmem>>, vector<8x2x1xf32>
    tpu.vector_store %arg4[%c0_73, %c0_74, %c0_75], %284 {strides = array<i32>} : memref<8x2x1xf32, #tpu.memory_space<vmem>>, vector<8x2x1xf32>,
    return
  }
}

</mosaic_0001>

<bundles_post_ra>
// kernel: lstm_fc_forward.1
= control target key start
LH: loop header
LB: loop body
LE: loop exit
PB: predicated region body
PF: predicated region fallthrough
CT: control target
= control target key end

     0   :  { %v2426_v3 = vmov 0.0   ;;  %vm1703_vm0 = vcmask 1041408   ;;  %vm1738_vm1 = vcmask 1024   ;;  %s3117_s1 = inlined_call_operand.vmem [shape: f32[128,512], index: 1, kind: input, shape index: {}]   ;;  %s3118_s0 = inlined_call_operand.vmem [shape: f32[8,2,512], index: 0, kind: input, shape index: {}]   ;;  %s3119_s2 = inlined_call_operand.vmem [shape: f32[1,128], index: 2, kind: input, shape index: {}]   ;;  %s3120_s3 = inlined_call_operand.<no memory space> [shape: f32[1], index: 3, kind: input, shape index: {}]   ;;  %s3121_s4 = inlined_call_operand.vmem [shape: f32[8,2,1], index: 4, kind: output, shape index: {}]  }
   0x1   :  { %v19_v0 = vld [vmem:[%s3117_s1 + $0x8] sm:$0xff]  ;;  %v21_v2 = vld [vmem:[%s3117_s1 + $0x18] sm:$0xff]  ;;  %147 = vmatprep.mubr.f32.mxu0 %v2426_v3  ;;  %218 = vmatprep.mubr.f32.mxu1 %v2426_v3  ;;  %v18_v6 = vld [vmem:[%s3117_s1] sm:$0xff] }
   0x2   :  { %v23_v1 = vld [vmem:[%s3117_s1 + $0x28] sm:$0xff]  ;;  %v25_v5 = vld [vmem:[%s3117_s1 + $0x38] sm:$0xff]  ;;  %v22_v7 = vld [vmem:[%s3117_s1 + $0x20] sm:$0xff] }
   0x3   :  { %v2464_v4 = vpack.c.bf16 %v23_v1, %v19_v0  ;;  %v2475_v8 = vpack.c.bf16 %v25_v5, %v21_v2  ;;  %v2477_v9 = vpack.c.bf16 %v22_v7, %v18_v6  ;;  %v20_v10 = vld [vmem:[%s3117_s1 + $0x10] sm:$0xff]  ;;  %v27_v12 = vld [vmem:[%s3117_s1 + $0x48] sm:$0xff]  ;;  %v29_v15 = vld [vmem:[%s3117_s1 + $0x58] sm:$0xff] }
   0x4   :  { %v24_v11 = vld [vmem:[%s3117_s1 + $0x30] sm:$0xff]  ;;  %v31_v14 = vld [vmem:[%s3117_s1 + $0x68] sm:$0xff]  ;;  %v33_v16 = vld [vmem:[%s3117_s1 + $0x78] sm:$0xff] }
   0x5   :  { %1784 = vmatprep.subr.bf16.mxu0 %v2464_v4  ;;  %v2489_v13 = vpack.c.bf16 %v24_v11, %v20_v10  ;;  %1816 = vmatprep.subr.bf16.mxu1 %v2475_v8  ;;  %v2502_v17 = vpack.c.bf16 %v31_v14, %v27_v12  ;;  %v2504_v18 = vpack.c.bf16 %v33_v16, %v29_v15  ;;  %v26_v19 = vld [vmem:[%s3117_s1 + $0x40] sm:$0xff]  ;;  %v28_v21 = vld [vmem:[%s3117_s1 + $0x50] sm:$0xff]  ;;  %v35_v24 = vld [vmem:[%s3117_s1 + $0x88] sm:$0xff] }
   0x6   :  { %1786 = vmatpush1.bf16.msra.mxu0 %v2477_v9  ;;  %v30_v20 = vld [vmem:[%s3117_s1 + $0x60] sm:$0xff]  ;;  %v32_v23 = vld [vmem:[%s3117_s1 + $0x70] sm:$0xff]  ;;  %v39_v25 = vld [vmem:[%s3117_s1 + $0xa8] sm:$0xff] }
   0x7   :  { %1818 = vmatpush1.bf16.msra.mxu1 %v2489_v13  ;;  %v2516_v22 = vpack.c.bf16 %v30_v20, %v26_v19  ;;  %1788 = vmatprep.subr.bf16.mxu0 %v2502_v17  ;;  %v2529_v26 = vpack.c.bf16 %v32_v23, %v28_v21  ;;  %v2531_v27 = vpack.c.bf16 %v39_v25, %v35_v24  ;;  %v37_v28 = vld [vmem:[%s3117_s1 + $0x98] sm:$0xff]  ;;  %v34_v30 = vld [vmem:[%s3117_s1 + $0x80] sm:$0xff]  ;;  %v36_v33 = vld [vmem:[%s3117_s1 + $0x90] sm:$0xff] }
   0x8   :  { %1820 = vmatprep.subr.bf16.mxu1 %v2504_v18  ;;  %v41_v29 = vld [vmem:[%s3117_s1 + $0xb8] sm:$0xff]  ;;  %v38_v32 = vld [vmem:[%s3117_s1 + $0xa0] sm:$0xff]  ;;  %v40_v34 = vld [vmem:[%s3117_s1 + $0xb0] sm:$0xff] }
   0x9   :  { %v2542_v31 = vpack.c.bf16 %v41_v29, %v37_v28  ;;  %v2554_v35 = vpack.c.bf16 %v38_v32, %v34_v30  ;;  %v43_v36 = vld [vmem:[%s3117_s1 + $0xc8] sm:$0xff]  ;;  %v45_v38 = vld [vmem:[%s3117_s1 + $0xd8] sm:$0xff]  ;;  %v2567_v39 = vpack.c.bf16 %v40_v34, %v36_v33  ;;  %v42_v42 = vld [vmem:[%s3117_s1 + $0xc0] sm:$0xff] }
   0xa   :  { %1790 = vmatpush1.bf16.msra.mxu0 %v2516_v22  ;;  %v47_v37 = vld [vmem:[%s3117_s1 + $0xe8] sm:$0xff]  ;;  %v49_v41 = vld [vmem:[%s3117_s1 + $0xf8] sm:$0xff]  ;;  %v46_v43 = vld [vmem:[%s3117_s1 + $0xe0] sm:$0xff] }
   0xb   :  { %1822 = vmatpush1.bf16.msra.mxu1 %v2529_v26  ;;  %1792 = vmatprep.subr.bf16.mxu0 %v2531_v27  ;;  %v2569_v40 = vpack.c.bf16 %v47_v37, %v43_v36  ;;  %v2581_v44 = vpack.c.bf16 %v49_v41, %v45_v38  ;;  %v44_v45 = vld [vmem:[%s3117_s1 + $0xd0] sm:$0xff]  ;;  %v51_v47 = vld [vmem:[%s3117_s1 + $0x108] sm:$0xff]  ;;  %v53_v49 = vld [vmem:[%s3117_s1 + $0x118] sm:$0xff]  ;;  %v2602_v51 = vpack.c.bf16 %v46_v43, %v42_v42 }
   0xc   :  { %1824 = vmatprep.subr.bf16.mxu1 %v2542_v31  ;;  %v48_v46 = vld [vmem:[%s3117_s1 + $0xf0] sm:$0xff]  ;;  %v55_v48 = vld [vmem:[%s3117_s1 + $0x128] sm:$0xff]  ;;  %v57_v50 = vld [vmem:[%s3117_s1 + $0x138] sm:$0xff] }
   0xd   :  { %v2606_v52 = vpack.c.bf16 %v48_v46, %v44_v45  ;;  %v2608_v53 = vpack.c.bf16 %v55_v48, %v51_v47  ;;  %v50_v54 = vld [vmem:[%s3117_s1 + $0x100] sm:$0xff]  ;;  %v52_v56 = vld [vmem:[%s3117_s1 + $0x110] sm:$0xff]  ;;  %v2620_v57 = vpack.c.bf16 %v57_v50, %v53_v49  ;;  %v59_v59 = vld [vmem:[%s3117_s1 + $0x148] sm:$0xff]  ;;  %v2427_v48 = vmov 1983009808  }
   0xe   :  { %1794 = vmatpush1.bf16.msra.mxu0 %v2554_v35  ;;  %v54_v55 = vld [vmem:[%s3117_s1 + $0x120] sm:$0xff]  ;;  %v56_v58 = vld [vmem:[%s3117_s1 + $0x130] sm:$0xff]  ;;  %v63_v60 = vld [vmem:[%s3117_s1 + $0x168] sm:$0xff]  ;;  %v232_v49 = vunpack.c.l.s4 %v2427_v48  ;;  %v234_v50 = vlaneseq }
   0xf   :  { %1826 = vmatpush1.bf16.msra.mxu1 %v2567_v39  ;;  %1796 = vmatprep.subr.bf16.mxu0 %v2569_v40  ;;  %v61_v61 = vld [vmem:[%s3117_s1 + $0x158] sm:$0xff]  ;;  %v2638_v63 = vpack.c.bf16 %v54_v55, %v50_v54  ;;  %v2642_v0 = vpack.c.bf16 %v56_v58, %v52_v56  ;;  %v2644_v1 = vpack.c.bf16 %v63_v60, %v59_v59  ;;  %v58_v2 = vld [vmem:[%s3117_s1 + $0x140] sm:$0xff]  ;;  %v60_v6 = vld [vmem:[%s3117_s1 + $0x150] sm:$0xff] }
  0x10   :  { %1828 = vmatprep.subr.bf16.mxu1 %v2581_v44  ;;  %v65_v62 = vld [vmem:[%s3117_s1 + $0x178] sm:$0xff]  ;;  %v62_v5 = vld [vmem:[%s3117_s1 + $0x160] sm:$0xff]  ;;  %v64_v10 = vld [vmem:[%s3117_s1 + $0x170] sm:$0xff]  ;;  %v233_v54 = vunpack.c.0.s8 %v232_v49  ;;  %v235_v55 = vshrl.u32 %v234_v50, 7 }
  0x11   :  { %v2656_v7 = vpack.c.bf16 %v65_v62, %v61_v61  ;;  %v67_v11 = vld [vmem:[%s3117_s1 + $0x188] sm:$0xff]  ;;  %v69_v14 = vld [vmem:[%s3117_s1 + $0x198] sm:$0xff]  ;;  %v2674_v16 = vpack.c.bf16 %v62_v5, %v58_v2  ;;  %v2678_v19 = vpack.c.bf16 %v64_v10, %v60_v6  ;;  %v66_v21 = vld [vmem:[%s3117_s1 + $0x180] sm:$0xff] }
  0x12   :  { %1798 = vmatpush1.bf16.msra.mxu0 %v2602_v51  ;;  %v71_v12 = vld [vmem:[%s3117_s1 + $0x1a8] sm:$0xff]  ;;  %v73_v15 = vld [vmem:[%s3117_s1 + $0x1b8] sm:$0xff]  ;;  %v70_v23 = vld [vmem:[%s3117_s1 + $0x1a0] sm:$0xff]  ;;  %v2781_v58 = vsub.s32 %v233_v54, %v235_v55 }
  0x13   :  { %1830 = vmatpush1.bf16.msra.mxu1 %v2606_v52  ;;  %1800 = vmatprep.subr.bf16.mxu0 %v2608_v53  ;;  %v2680_v20 = vpack.c.bf16 %v71_v12, %v67_v11  ;;  %v68_v24 = vld [vmem:[%s3117_s1 + $0x190] sm:$0xff]  ;;  %v2692_v25 = vpack.c.bf16 %v73_v15, %v69_v14  ;;  %v75_v29 = vld [vmem:[%s3117_s1 + $0x1c8] sm:$0xff]  ;;  %v77_v32 = vld [vmem:[%s3117_s1 + $0x1d8] sm:$0xff]  ;;  %v2710_v34 = vpack.c.bf16 %v70_v23, %v66_v21 }
  0x14   :  { %1832 = vmatprep.subr.bf16.mxu1 %v2620_v57  ;;  %v72_v28 = vld [vmem:[%s3117_s1 + $0x1b0] sm:$0xff]  ;;  %v79_v30 = vld [vmem:[%s3117_s1 + $0x1e8] sm:$0xff]  ;;  %v81_v33 = vld [vmem:[%s3117_s1 + $0x1f8] sm:$0xff] }
  0x15   :  { %v2714_v36 = vpack.c.bf16 %v72_v28, %v68_v24  ;;  %v2716_v37 = vpack.c.bf16 %v79_v30, %v75_v29  ;;  %v74_v38 = vld [vmem:[%s3117_s1 + $0x1c0] sm:$0xff]  ;;  %v2725_v42 = vpack.c.bf16 %v81_v33, %v77_v32  ;;  %v76_v43 = vld [vmem:[%s3117_s1 + $0x1d0] sm:$0xff] }
  0x16   :  { %1802 = vmatpush1.bf16.msra.mxu0 %v2638_v63  ;;  %v78_v41 = vld [vmem:[%s3117_s1 + $0x1e0] sm:$0xff]  ;;  %v80_v45 = vld [vmem:[%s3117_s1 + $0x1f0] sm:$0xff] }
  0x17   :  { %1834 = vmatpush1.bf16.msra.mxu1 %v2642_v0  ;;  %1804 = vmatprep.subr.bf16.mxu0 %v2644_v1  ;;  %v2734_v46 = vpack.c.bf16 %v78_v41, %v74_v38  ;;  %v2738_v47 = vpack.c.bf16 %v80_v45, %v76_v43  ;;  %v82_v10 = vld [vmem:[%s3118_s0] sm:$0xff] }
  0x18   :  { %1836 = vmatprep.subr.bf16.mxu1 %v2656_v7 }
  0x1a   :  { %1806 = vmatpush1.bf16.msra.mxu0 %v2674_v16 }
  0x1b   :  { %1838 = vmatpush1.bf16.msra.mxu1 %v2678_v19  ;;  %1808 = vmatprep.subr.bf16.mxu0 %v2680_v20 }
  0x1c   :  { %1840 = vmatprep.subr.bf16.mxu1 %v2692_v25 }
  0x1e   :  { %1810 = vmatpush1.bf16.msra.mxu0 %v2710_v34 }
  0x1f   :  { %1842 = vmatpush1.bf16.msra.mxu1 %v2714_v36  ;;  %1812 = vmatprep.subr.bf16.mxu0 %v2716_v37 }
  0x20   :  { %1844 = vmatprep.subr.bf16.mxu1 %v2725_v42 }
  0x22   :  { %1814 = vmatpush1.bf16.msra.mxu0 %v2734_v46 }
  0x23   :  { %1846 = vmatpush1.bf16.msra.mxu1 %v2738_v47  ;;  %1848 = vmatprep.subr.bf16.mxu0 %v2464_v4 }
  0x24   :  { %1880 = vmatprep.subr.bf16.mxu1 %v2475_v8 }
  0x25   :  { %148 = vmatmul.mubr.f32.vlgmr.msra.gmra.mrb[0].mxu0 %v2426_v3 }
  0x26   :  { %219 = vmatmul.mubr.f32.vlgmr.msra.gmra.mrb[0].mxu1 %v2426_v3  ;;  %1850 = vmatpush1.bf16.msra.mxu0 %v2477_v9 }
  0x27   :  { %1882 = vmatpush1.bf16.msra.mxu1 %v2489_v13  ;;  %1852 = vmatprep.subr.bf16.mxu0 %v2502_v17 }
  0x28   :  { %1884 = vmatprep.subr.bf16.mxu1 %v2504_v18  ;;  %346 = vmatprep.mubr.f32.mxu0 %v2426_v3 }
  0x29   :  { %417 = vmatprep.mubr.f32.mxu1 %v2426_v3 }
  0x2a   :  { %1854 = vmatpush1.bf16.msra.mxu0 %v2516_v22 }
  0x2b   :  { %1886 = vmatpush1.bf16.msra.mxu1 %v2529_v26  ;;  %1856 = vmatprep.subr.bf16.mxu0 %v2531_v27 }
  0x2c   :  { %1888 = vmatprep.subr.bf16.mxu1 %v2542_v31 }
  0x2e   :  { %1858 = vmatpush1.bf16.msra.mxu0 %v2554_v35 }
  0x2f   :  { %1890 = vmatpush1.bf16.msra.mxu1 %v2567_v39  ;;  %1860 = vmatprep.subr.bf16.mxu0 %v2569_v40 }
  0x30   :  { %1892 = vmatprep.subr.bf16.mxu1 %v2581_v44 }
  0x32   :  { %1862 = vmatpush1.bf16.msra.mxu0 %v2602_v51 }
  0x33   :  { %1894 = vmatpush1.bf16.msra.mxu1 %v2606_v52  ;;  %1864 = vmatprep.subr.bf16.mxu0 %v2608_v53 }
  0x34   :  { %1896 = vmatprep.subr.bf16.mxu1 %v2620_v57 }
  0x36   :  { %1866 = vmatpush1.bf16.msra.mxu0 %v2638_v63 }
  0x37   :  { %1898 = vmatpush1.bf16.msra.mxu1 %v2642_v0  ;;  %1868 = vmatprep.subr.bf16.mxu0 %v2644_v1 }
  0x38   :  { %1900 = vmatprep.subr.bf16.mxu1 %v2656_v7 }
  0x3a   :  { %1870 = vmatpush1.bf16.msra.mxu0 %v2674_v16 }
  0x3b   :  { %1902 = vmatpush1.bf16.msra.mxu1 %v2678_v19  ;;  %1872 = vmatprep.subr.bf16.mxu0 %v2680_v20 }
  0x3c   :  { %1904 = vmatprep.subr.bf16.mxu1 %v2692_v25 }
  0x3e   :  { %1874 = vmatpush1.bf16.msra.mxu0 %v2710_v34 }
  0x3f   :  { %1906 = vmatpush1.bf16.msra.mxu1 %v2714_v36  ;;  %1876 = vmatprep.subr.bf16.mxu0 %v2716_v37 }
  0x40   :  { %1908 = vmatprep.subr.bf16.mxu1 %v2725_v42 }
  0x42   :  { %1878 = vmatpush1.bf16.msra.mxu0 %v2734_v46 }
  0x43   :  { %1910 = vmatpush1.bf16.msra.mxu1 %v2738_v47  ;;  %1912 = vmatprep.subr.bf16.mxu0 %v2464_v4 }
  0x44   :  { %1944 = vmatprep.subr.bf16.mxu1 %v2475_v8 }
  0xf8   :  { %v149_v56 = vpop.f32.mrb[0].mxu0 }
  0xf9   :  { %v220_v59 = vpop.f32.mrb[0].mxu1  ;;  %v151_v60 = vpop.f32.mrb[1].mxu0 }
  0xfa   :  { %v229_v61 = vcombine.low %v149_v56, %v151_v60  ;;  %v222_v62 = vpop.f32.mrb[1].mxu1  ;;  %v2800_v60 = vld [vmem:[%s3119_s2] ss:$0 sm:$0xff] }
  0xfb   :  { %v230_v2 = vcombine.low %v220_v59, %v222_v62 }
  0xfc   :  { %v237_v5 = vrot.slane %v229_v61, %v2781_v58 }
  0xfd   :  { %v244_v6 = vrot.slane %v230_v2, %v2781_v58 }
  0xff   :  { %v245_v11 = vcombine.low %v237_v5, %v244_v6  ;;  %v2835_v5 = vstv %s3120_s3 }
 0x101   :  { %v247_v12 = vadd.f32 %v245_v11, %v82_v10 }
 0x103   :  { %v1751_v14 = vmul.f32 -1.442695, %v247_v12  ;;  %v255_v15 = vrot.slane %v247_v12, 2  ;;  %v266_v23 = vrot.slane %v247_v12, 6  ;;  %v263_v29 = vrot.slane %v247_v12, 4 }
 0x105   :  { %2297 = vpow2.f32 %v1751_v14  ;;  %v1752_v21 = vmul.f32 -1.442695, %v255_v15  ;;  %v1753_v24 = vmul.f32 -1.442695, %v266_v23 }
 0x107   :  { %2299 = vpow2.f32 %v1752_v21 }
 0x108   :  { %2301 = vpow2.f32 %v1753_v24 }
 0x10f   :  { %v2298_v28 = vpop.eup %2297 }
 0x110   :  { %v251_v30 = vadd.f32 1.0, %v2298_v28 }
 0x111   :  { %v2300_v32 = vpop.eup %2299 }
 0x112   :  { %2303 = vrcp.f32 %v251_v30  ;;  %v260_v33 = vadd.f32 1.0, %v2300_v32  ;;  %v2302_v38 = vpop.eup %2301 }
 0x113   :  { %2305 = vtanh.f32 %v263_v29  ;;  %v271_v48 = vadd.f32 1.0, %v2302_v38  ;;  %v1754_v29 = vld [vmem:[%s3118_s0 + $0x8] sm:$0xff] }
 0x114   :  { %2307 = vrcp.f32 %v260_v33 }
 0x115   :  { %2309 = vrcp.f32 %v271_v48 }
 0x11c   :  { %v2304_v41 = vpop.eup %2303 }
 0x11d   :  { %v2306_v43 = vpop.eup %2305 }
 0x11e   :  { %v2308_v45 = vpop.eup %2307  ;;  %v275_v50 = vmul.f32 %v2306_v43, %v2304_v41 }
 0x11f   :  { %v274_v49 = vmul.f32 0.0, %v2308_v45  ;;  %v2310_v55 = vpop.eup %2309 }
 0x121   :  { %v2788_v54 = vadd.f32 %v275_v50, %v274_v49 }
 0x123   :  { %2311 = vtanh.f32 %v2788_v54 }
 0x12d   :  { %v2312_v56 = vpop.eup %2311 }
 0x12e   :  { %v278_v59 = vmul.f32 %v2312_v56, %v2310_v55 }
 0x130   :  { %279 = vst [vmem:[#allocation2] sm:$0x3] %v278_v59  ;;  %347 = vmatmul.mubr.f32.vlgmr.msra.gmra.mrb[2].mxu0 %v278_v59  ;;  %418 = vmatmul.mubr.f32.vlgmr.msra.gmra.mrb[2].mxu1 %v278_v59 }
 0x131   :  { %1914 = vmatpush1.bf16.msra.mxu0 %v2477_v9  ;;  %1946 = vmatpush1.bf16.msra.mxu1 %v2489_v13 }
 0x132   :  { %1916 = vmatprep.subr.bf16.mxu0 %v2502_v17  ;;  %1948 = vmatprep.subr.bf16.mxu1 %v2504_v18 }
 0x133   :  { %546 = vmatprep.mubr.f32.mxu0 %v2426_v3  ;;  %617 = vmatprep.mubr.f32.mxu1 %v2426_v3 }
 0x135   :  { %1918 = vmatpush1.bf16.msra.mxu0 %v2516_v22  ;;  %1950 = vmatpush1.bf16.msra.mxu1 %v2529_v26 }
 0x136   :  { %1920 = vmatprep.subr.bf16.mxu0 %v2531_v27  ;;  %1952 = vmatprep.subr.bf16.mxu1 %v2542_v31 }
 0x137   :  { %v1680_v61 = vld [vmem:[#allocation2] sm:$0x3] }
 0x138   :  { %v1695_v62 = vmul.f32 %v2800_v60, %v1680_v61 }
 0x139   :  { %1922 = vmatpush1.bf16.msra.mxu0 %v2554_v35  ;;  %1954 = vmatpush1.bf16.msra.mxu1 %v2567_v39 }
 0x13a   :  { %v1704_v2 = vsel %vm1703_vm0, %v1695_v62, 0.0  ;;  %1924 = vmatprep.subr.bf16.mxu0 %v2569_v40  ;;  %1956 = vmatprep.subr.bf16.mxu1 %v2581_v44 }
 0x13b   :  { %1705 = vadd.xlane.f32.xlu0 %v1704_v2 }
 0x13d   :  { %1926 = vmatpush1.bf16.msra.mxu0 %v2602_v51  ;;  %1958 = vmatpush1.bf16.msra.mxu1 %v2606_v52 }
 0x13e   :  { %1928 = vmatprep.subr.bf16.mxu0 %v2608_v53  ;;  %1960 = vmatprep.subr.bf16.mxu1 %v2620_v57 }
 0x141   :  { %1930 = vmatpush1.bf16.msra.mxu0 %v2638_v63  ;;  %1962 = vmatpush1.bf16.msra.mxu1 %v2642_v0 }
 0x142   :  { %1932 = vmatprep.subr.bf16.mxu0 %v2644_v1  ;;  %1964 = vmatprep.subr.bf16.mxu1 %v2656_v7 }
 0x145   :  { %1934 = vmatpush1.bf16.msra.mxu0 %v2674_v16  ;;  %1966 = vmatpush1.bf16.msra.mxu1 %v2678_v19 }
 0x146   :  { %1936 = vmatprep.subr.bf16.mxu0 %v2680_v20  ;;  %1968 = vmatprep.subr.bf16.mxu1 %v2692_v25 }
 0x149   :  { %1938 = vmatpush1.bf16.msra.mxu0 %v2710_v34  ;;  %1970 = vmatpush1.bf16.msra.mxu1 %v2714_v36 }
 0x14a   :  { %1940 = vmatprep.subr.bf16.mxu0 %v2716_v37  ;;  %1972 = vmatprep.subr.bf16.mxu1 %v2725_v42 }
 0x14d   :  { %1942 = vmatpush1.bf16.msra.mxu0 %v2734_v46  ;;  %1974 = vmatpush1.bf16.msra.mxu1 %v2738_v47 }
 0x14e   :  { %1976 = vmatprep.subr.bf16.mxu0 %v2464_v4  ;;  %2008 = vmatprep.subr.bf16.mxu1 %v2475_v8 }
 0x1c8   :  { %v1706_v6 = vpop.xlane.xlu0 %1705 }
 0x1c9   :  { %v1730_v10 = vadd.f32 %v2835_v5, %v1706_v6 }
 0x1cb   :  { %1739 = vst.msk [vmem:[%s3121_s4] sm:$0x3] %vm1738_vm1, %v1730_v10 }
 0x203   :  { %v348_v11 = vpop.f32.mrb[2].mxu0  ;;  %v419_v12 = vpop.f32.mrb[2].mxu1 }
 0x204   :  { %v350_v14 = vpop.f32.mrb[3].mxu0  ;;  %v421_v15 = vpop.f32.mrb[3].mxu1 }
 0x205   :  { %v428_v21 = vcombine.low %v348_v11, %v350_v14  ;;  %v429_v23 = vcombine.low %v419_v12, %v421_v15 }
 0x207   :  { %v436_v24 = vrot.slane %v428_v21, %v2781_v58  ;;  %v443_v28 = vrot.slane %v429_v23, %v2781_v58 }
 0x209   :  { %v444_v30 = vcombine.low %v436_v24, %v443_v28 }
 0x20b   :  { %v446_v32 = vadd.f32 %v1754_v29, %v444_v30 }
 0x20d   :  { %v1755_v33 = vmul.f32 -1.442695, %v446_v32  ;;  %v454_v38 = vrot.slane %v446_v32, 2  ;;  %v465_v43 = vrot.slane %v446_v32, 6  ;;  %v462_v49 = vrot.slane %v446_v32, 4 }
 0x20f   :  { %2313 = vpow2.f32 %v1755_v33  ;;  %v1756_v41 = vmul.f32 -1.442695, %v454_v38  ;;  %v1757_v45 = vmul.f32 -1.442695, %v465_v43 }
 0x211   :  { %2315 = vpow2.f32 %v1756_v41 }
 0x212   :  { %2317 = vpow2.f32 %v1757_v45 }
 0x219   :  { %v2314_v48 = vpop.eup %2313 }
 0x21a   :  { %v450_v50 = vadd.f32 1.0, %v2314_v48 }
 0x21b   :  { %v2316_v55 = vpop.eup %2315 }
 0x21c   :  { %2319 = vrcp.f32 %v450_v50  ;;  %v459_v56 = vadd.f32 1.0, %v2316_v55  ;;  %v2318_v59 = vpop.eup %2317 }
 0x21d   :  { %2321 = vtanh.f32 %v462_v49  ;;  %v470_v6 = vadd.f32 1.0, %v2318_v59  ;;  %v1758_v49 = vld [vmem:[%s3118_s0 + $0x10] sm:$0xff] }
 0x21e   :  { %2323 = vrcp.f32 %v459_v56 }
 0x21f   :  { %2325 = vrcp.f32 %v470_v6 }
 0x226   :  { %v2320_v61 = vpop.eup %2319 }
 0x227   :  { %v2322_v62 = vpop.eup %2321 }
 0x228   :  { %v2324_v2 = vpop.eup %2323  ;;  %v474_v11 = vmul.f32 %v2322_v62, %v2320_v61 }
 0x229   :  { %v473_v10 = vmul.f32 %v2324_v2, %v2788_v54  ;;  %v2326_v14 = vpop.eup %2325 }
 0x22b   :  { %v2848_v12 = vadd.f32 %v474_v11, %v473_v10 }
 0x22d   :  { %2327 = vtanh.f32 %v2848_v12 }
 0x237   :  { %v2328_v15 = vpop.eup %2327 }
 0x238   :  { %v477_v21 = vmul.f32 %v2328_v15, %v2326_v14 }
 0x23a   :  { %479 = vst [vmem:[#allocation2 + $0x2] sm:$0x3] %v477_v21  ;;  %547 = vmatmul.mubr.f32.vlgmr.msra.gmra.mrb[4].mxu0 %v477_v21  ;;  %618 = vmatmul.mubr.f32.vlgmr.msra.gmra.mrb[4].mxu1 %v477_v21 }
 0x23b   :  { %1978 = vmatpush1.bf16.msra.mxu0 %v2477_v9  ;;  %2010 = vmatpush1.bf16.msra.mxu1 %v2489_v13 }
 0x23c   :  { %1980 = vmatprep.subr.bf16.mxu0 %v2502_v17  ;;  %2012 = vmatprep.subr.bf16.mxu1 %v2504_v18 }
 0x23d   :  { %746 = vmatprep.mubr.f32.mxu0 %v2426_v3  ;;  %817 = vmatprep.mubr.f32.mxu1 %v2426_v3 }
 0x23f   :  { %1982 = vmatpush1.bf16.msra.mxu0 %v2516_v22  ;;  %2014 = vmatpush1.bf16.msra.mxu1 %v2529_v26 }
 0x240   :  { %1984 = vmatprep.subr.bf16.mxu0 %v2531_v27  ;;  %2016 = vmatprep.subr.bf16.mxu1 %v2542_v31 }
 0x241   :  { %v1681_v54 = vld [vmem:[#allocation2 + $0x2] sm:$0x3] }
 0x242   :  { %v1696_v23 = vmul.f32 %v2800_v60, %v1681_v54 }
 0x243   :  { %1986 = vmatpush1.bf16.msra.mxu0 %v2554_v35  ;;  %2018 = vmatpush1.bf16.msra.mxu1 %v2567_v39 }
 0x244   :  { %v1707_v24 = vsel %vm1703_vm0, %v1696_v23, 0.0  ;;  %1988 = vmatprep.subr.bf16.mxu0 %v2569_v40  ;;  %2020 = vmatprep.subr.bf16.mxu1 %v2581_v44 }
 0x245   :  { %1708 = vadd.xlane.f32.xlu0 %v1707_v24 }
 0x247   :  { %1990 = vmatpush1.bf16.msra.mxu0 %v2602_v51  ;;  %2022 = vmatpush1.bf16.msra.mxu1 %v2606_v52 }
 0x248   :  { %1992 = vmatprep.subr.bf16.mxu0 %v2608_v53  ;;  %2024 = vmatprep.subr.bf16.mxu1 %v2620_v57 }
 0x24b   :  { %1994 = vmatpush1.bf16.msra.mxu0 %v2638_v63  ;;  %2026 = vmatpush1.bf16.msra.mxu1 %v2642_v0 }
 0x24c   :  { %1996 = vmatprep.subr.bf16.mxu0 %v2644_v1  ;;  %2028 = vmatprep.subr.bf16.mxu1 %v2656_v7 }
 0x24f   :  { %1998 = vmatpush1.bf16.msra.mxu0 %v2674_v16  ;;  %2030 = vmatpush1.bf16.msra.mxu1 %v2678_v19 }
 0x250   :  { %2000 = vmatprep.subr.bf16.mxu0 %v2680_v20  ;;  %2032 = vmatprep.subr.bf16.mxu1 %v2692_v25 }
 0x253   :  { %2002 = vmatpush1.bf16.msra.mxu0 %v2710_v34  ;;  %2034 = vmatpush1.bf16.msra.mxu1 %v2714_v36 }
 0x254   :  { %2004 = vmatprep.subr.bf16.mxu0 %v2716_v37  ;;  %2036 = vmatprep.subr.bf16.mxu1 %v2725_v42 }
 0x257   :  { %2006 = vmatpush1.bf16.msra.mxu0 %v2734_v46  ;;  %2038 = vmatpush1.bf16.msra.mxu1 %v2738_v47 }
 0x258   :  { %2040 = vmatprep.subr.bf16.mxu0 %v2464_v4  ;;  %2072 = vmatprep.subr.bf16.mxu1 %v2475_v8 }
 0x2d2   :  { %v1709_v28 = vpop.xlane.xlu0 %1708 }
 0x2d3   :  { %v1731_v29 = vadd.f32 %v2835_v5, %v1709_v28 }
 0x2d5   :  { %1740 = vst.msk [vmem:[%s3121_s4 + $0x2] sm:$0x3] %vm1738_vm1, %v1731_v29 }
 0x30d   :  { %v548_v30 = vpop.f32.mrb[4].mxu0  ;;  %v619_v32 = vpop.f32.mrb[4].mxu1 }
 0x30e   :  { %v550_v33 = vpop.f32.mrb[5].mxu0  ;;  %v621_v38 = vpop.f32.mrb[5].mxu1 }
 0x30f   :  { %v628_v41 = vcombine.low %v548_v30, %v550_v33  ;;  %v629_v43 = vcombine.low %v619_v32, %v621_v38 }
 0x311   :  { %v636_v45 = vrot.slane %v628_v41, %v2781_v58  ;;  %v643_v48 = vrot.slane %v629_v43, %v2781_v58 }
 0x313   :  { %v644_v50 = vcombine.low %v636_v45, %v643_v48 }
 0x315   :  { %v646_v55 = vadd.f32 %v1758_v49, %v644_v50 }
 0x317   :  { %v1759_v56 = vmul.f32 -1.442695, %v646_v55  ;;  %v654_v59 = vrot.slane %v646_v55, 2  ;;  %v665_v62 = vrot.slane %v646_v55, 6  ;;  %v662_v10 = vrot.slane %v646_v55, 4 }
 0x319   :  { %2329 = vpow2.f32 %v1759_v56  ;;  %v1760_v61 = vmul.f32 -1.442695, %v654_v59  ;;  %v1761_v2 = vmul.f32 -1.442695, %v665_v62 }
 0x31b   :  { %2331 = vpow2.f32 %v1760_v61 }
 0x31c   :  { %2333 = vpow2.f32 %v1761_v2 }
 0x323   :  { %v2330_v6 = vpop.eup %2329 }
 0x324   :  { %v650_v11 = vadd.f32 1.0, %v2330_v6 }
 0x325   :  { %v2332_v14 = vpop.eup %2331 }
 0x326   :  { %2335 = vrcp.f32 %v650_v11  ;;  %v659_v15 = vadd.f32 1.0, %v2332_v14  ;;  %v2334_v21 = vpop.eup %2333 }
 0x327   :  { %2337 = vtanh.f32 %v662_v10  ;;  %v670_v28 = vadd.f32 1.0, %v2334_v21  ;;  %v1762_v10 = vld [vmem:[%s3118_s0 + $0x18] sm:$0xff] }
 0x328   :  { %2339 = vrcp.f32 %v659_v15 }
 0x329   :  { %2341 = vrcp.f32 %v670_v28 }
 0x330   :  { %v2336_v54 = vpop.eup %2335 }
 0x331   :  { %v2338_v23 = vpop.eup %2337 }
 0x332   :  { %v2340_v24 = vpop.eup %2339  ;;  %v674_v30 = vmul.f32 %v2338_v23, %v2336_v54 }
 0x333   :  { %v673_v29 = vmul.f32 %v2340_v24, %v2848_v12  ;;  %v2342_v33 = vpop.eup %2341 }
 0x335   :  { %v2898_v32 = vadd.f32 %v674_v30, %v673_v29 }
 0x337   :  { %2343 = vtanh.f32 %v2898_v32 }
 0x341   :  { %v2344_v38 = vpop.eup %2343 }
 0x342   :  { %v677_v41 = vmul.f32 %v2344_v38, %v2342_v33 }
 0x344   :  { %679 = vst [vmem:[#allocation2 + $0x4] sm:$0x3] %v677_v41  ;;  %747 = vmatmul.mubr.f32.vlgmr.msra.gmra.mrb[6].mxu0 %v677_v41  ;;  %818 = vmatmul.mubr.f32.vlgmr.msra.gmra.mrb[6].mxu1 %v677_v41 }
 0x345   :  { %2042 = vmatpush1.bf16.msra.mxu0 %v2477_v9  ;;  %2074 = vmatpush1.bf16.msra.mxu1 %v2489_v13 }
 0x346   :  { %2044 = vmatprep.subr.bf16.mxu0 %v2502_v17  ;;  %2076 = vmatprep.subr.bf16.mxu1 %v2504_v18 }
 0x347   :  { %946 = vmatprep.mubr.f32.mxu0 %v2426_v3  ;;  %1017 = vmatprep.mubr.f32.mxu1 %v2426_v3 }
 0x349   :  { %2046 = vmatpush1.bf16.msra.mxu0 %v2516_v22  ;;  %2078 = vmatpush1.bf16.msra.mxu1 %v2529_v26 }
 0x34a   :  { %2048 = vmatprep.subr.bf16.mxu0 %v2531_v27  ;;  %2080 = vmatprep.subr.bf16.mxu1 %v2542_v31 }
 0x34b   :  { %v1682_v12 = vld [vmem:[#allocation2 + $0x4] sm:$0x3] }
 0x34c   :  { %v1697_v43 = vmul.f32 %v2800_v60, %v1682_v12 }
 0x34d   :  { %2050 = vmatpush1.bf16.msra.mxu0 %v2554_v35  ;;  %2082 = vmatpush1.bf16.msra.mxu1 %v2567_v39 }
 0x34e   :  { %v1710_v45 = vsel %vm1703_vm0, %v1697_v43, 0.0  ;;  %2052 = vmatprep.subr.bf16.mxu0 %v2569_v40  ;;  %2084 = vmatprep.subr.bf16.mxu1 %v2581_v44 }
 0x34f   :  { %1711 = vadd.xlane.f32.xlu1 %v1710_v45 }
 0x351   :  { %2054 = vmatpush1.bf16.msra.mxu0 %v2602_v51  ;;  %2086 = vmatpush1.bf16.msra.mxu1 %v2606_v52 }
 0x352   :  { %2056 = vmatprep.subr.bf16.mxu0 %v2608_v53  ;;  %2088 = vmatprep.subr.bf16.mxu1 %v2620_v57 }
 0x355   :  { %2058 = vmatpush1.bf16.msra.mxu0 %v2638_v63  ;;  %2090 = vmatpush1.bf16.msra.mxu1 %v2642_v0 }
 0x356   :  { %2060 = vmatprep.subr.bf16.mxu0 %v2644_v1  ;;  %2092 = vmatprep.subr.bf16.mxu1 %v2656_v7 }
 0x359   :  { %2062 = vmatpush1.bf16.msra.mxu0 %v2674_v16  ;;  %2094 = vmatpush1.bf16.msra.mxu1 %v2678_v19 }
 0x35a   :  { %2064 = vmatprep.subr.bf16.mxu0 %v2680_v20  ;;  %2096 = vmatprep.subr.bf16.mxu1 %v2692_v25 }
 0x35d   :  { %2066 = vmatpush1.bf16.msra.mxu0 %v2710_v34  ;;  %2098 = vmatpush1.bf16.msra.mxu1 %v2714_v36 }
 0x35e   :  { %2068 = vmatprep.subr.bf16.mxu0 %v2716_v37  ;;  %2100 = vmatprep.subr.bf16.mxu1 %v2725_v42 }
 0x361   :  { %2070 = vmatpush1.bf16.msra.mxu0 %v2734_v46  ;;  %2102 = vmatpush1.bf16.msra.mxu1 %v2738_v47 }
 0x362   :  { %2104 = vmatprep.subr.bf16.mxu0 %v2464_v4  ;;  %2136 = vmatprep.subr.bf16.mxu1 %v2475_v8 }
 0x3dc   :  { %v1712_v48 = vpop.xlane.xlu1 %1711 }
 0x3dd   :  { %v1732_v49 = vadd.f32 %v2835_v5, %v1712_v48 }
 0x3df   :  { %1741 = vst.msk [vmem:[%s3121_s4 + $0x4] sm:$0x3] %vm1738_vm1, %v1732_v49 }
 0x417   :  { %v748_v50 = vpop.f32.mrb[6].mxu0  ;;  %v819_v55 = vpop.f32.mrb[6].mxu1 }
 0x418   :  { %v750_v56 = vpop.f32.mrb[7].mxu0  ;;  %v821_v59 = vpop.f32.mrb[7].mxu1 }
 0x419   :  { %v828_v61 = vcombine.low %v748_v50, %v750_v56  ;;  %v829_v62 = vcombine.low %v819_v55, %v821_v59 }
 0x41b   :  { %v836_v2 = vrot.slane %v828_v61, %v2781_v58  ;;  %v843_v6 = vrot.slane %v829_v62, %v2781_v58 }
 0x41d   :  { %v844_v11 = vcombine.low %v836_v2, %v843_v6 }
 0x41f   :  { %v846_v14 = vadd.f32 %v1762_v10, %v844_v11 }
 0x421   :  { %v1763_v15 = vmul.f32 -1.442695, %v846_v14  ;;  %v854_v21 = vrot.slane %v846_v14, 2  ;;  %v865_v23 = vrot.slane %v846_v14, 6  ;;  %v862_v29 = vrot.slane %v846_v14, 4 }
 0x423   :  { %2345 = vpow2.f32 %v1763_v15  ;;  %v1764_v54 = vmul.f32 -1.442695, %v854_v21  ;;  %v1765_v24 = vmul.f32 -1.442695, %v865_v23 }
 0x425   :  { %2347 = vpow2.f32 %v1764_v54 }
 0x426   :  { %2349 = vpow2.f32 %v1765_v24 }
 0x42d   :  { %v2346_v28 = vpop.eup %2345 }
 0x42e   :  { %v850_v30 = vadd.f32 1.0, %v2346_v28 }
 0x42f   :  { %v2348_v33 = vpop.eup %2347 }
 0x430   :  { %2351 = vrcp.f32 %v850_v30  ;;  %v859_v38 = vadd.f32 1.0, %v2348_v33  ;;  %v2350_v41 = vpop.eup %2349 }
 0x431   :  { %2353 = vtanh.f32 %v862_v29  ;;  %v870_v48 = vadd.f32 1.0, %v2350_v41  ;;  %v1766_v29 = vld [vmem:[%s3118_s0 + $0x20] sm:$0xff] }
 0x432   :  { %2355 = vrcp.f32 %v859_v38 }
 0x433   :  { %2357 = vrcp.f32 %v870_v48 }
 0x43a   :  { %v2352_v12 = vpop.eup %2351 }
 0x43b   :  { %v2354_v43 = vpop.eup %2353 }
 0x43c   :  { %v2356_v45 = vpop.eup %2355  ;;  %v874_v50 = vmul.f32 %v2354_v43, %v2352_v12 }
 0x43d   :  { %v873_v49 = vmul.f32 %v2356_v45, %v2898_v32  ;;  %v2358_v56 = vpop.eup %2357 }
 0x43f   :  { %v2948_v55 = vadd.f32 %v874_v50, %v873_v49 }
 0x441   :  { %2359 = vtanh.f32 %v2948_v55 }
 0x44b   :  { %v2360_v59 = vpop.eup %2359 }
 0x44c   :  { %v877_v61 = vmul.f32 %v2360_v59, %v2358_v56 }
 0x44e   :  { %879 = vst [vmem:[#allocation2 + $0x6] sm:$0x3] %v877_v61  ;;  %947 = vmatmul.mubr.f32.vlgmr.msra.gmra.mrb[8].mxu0 %v877_v61  ;;  %1018 = vmatmul.mubr.f32.vlgmr.msra.gmra.mrb[8].mxu1 %v877_v61 }
 0x44f   :  { %2106 = vmatpush1.bf16.msra.mxu0 %v2477_v9  ;;  %2138 = vmatpush1.bf16.msra.mxu1 %v2489_v13 }
 0x450   :  { %2108 = vmatprep.subr.bf16.mxu0 %v2502_v17  ;;  %2140 = vmatprep.subr.bf16.mxu1 %v2504_v18 }
 0x451   :  { %1146 = vmatprep.mubr.f32.mxu0 %v2426_v3  ;;  %1217 = vmatprep.mubr.f32.mxu1 %v2426_v3 }
 0x453   :  { %2110 = vmatpush1.bf16.msra.mxu0 %v2516_v22  ;;  %2142 = vmatpush1.bf16.msra.mxu1 %v2529_v26 }
 0x454   :  { %2112 = vmatprep.subr.bf16.mxu0 %v2531_v27  ;;  %2144 = vmatprep.subr.bf16.mxu1 %v2542_v31 }
 0x455   :  { %v1683_v32 = vld [vmem:[#allocation2 + $0x6] sm:$0x3] }
 0x456   :  { %v1698_v62 = vmul.f32 %v2800_v60, %v1683_v32 }
 0x457   :  { %2114 = vmatpush1.bf16.msra.mxu0 %v2554_v35  ;;  %2146 = vmatpush1.bf16.msra.mxu1 %v2567_v39 }
 0x458   :  { %v1713_v2 = vsel %vm1703_vm0, %v1698_v62, 0.0  ;;  %2116 = vmatprep.subr.bf16.mxu0 %v2569_v40  ;;  %2148 = vmatprep.subr.bf16.mxu1 %v2581_v44 }
 0x459   :  { %1714 = vadd.xlane.f32.xlu1 %v1713_v2 }
 0x45b   :  { %2118 = vmatpush1.bf16.msra.mxu0 %v2602_v51  ;;  %2150 = vmatpush1.bf16.msra.mxu1 %v2606_v52 }
 0x45c   :  { %2120 = vmatprep.subr.bf16.mxu0 %v2608_v53  ;;  %2152 = vmatprep.subr.bf16.mxu1 %v2620_v57 }
 0x45f   :  { %2122 = vmatpush1.bf16.msra.mxu0 %v2638_v63  ;;  %2154 = vmatpush1.bf16.msra.mxu1 %v2642_v0 }
 0x460   :  { %2124 = vmatprep.subr.bf16.mxu0 %v2644_v1  ;;  %2156 = vmatprep.subr.bf16.mxu1 %v2656_v7 }
 0x463   :  { %2126 = vmatpush1.bf16.msra.mxu0 %v2674_v16  ;;  %2158 = vmatpush1.bf16.msra.mxu1 %v2678_v19 }
 0x464   :  { %2128 = vmatprep.subr.bf16.mxu0 %v2680_v20  ;;  %2160 = vmatprep.subr.bf16.mxu1 %v2692_v25 }
 0x467   :  { %2130 = vmatpush1.bf16.msra.mxu0 %v2710_v34  ;;  %2162 = vmatpush1.bf16.msra.mxu1 %v2714_v36 }
 0x468   :  { %2132 = vmatprep.subr.bf16.mxu0 %v2716_v37  ;;  %2164 = vmatprep.subr.bf16.mxu1 %v2725_v42 }
 0x46b   :  { %2134 = vmatpush1.bf16.msra.mxu0 %v2734_v46  ;;  %2166 = vmatpush1.bf16.msra.mxu1 %v2738_v47 }
 0x46c   :  { %2168 = vmatprep.subr.bf16.mxu0 %v2464_v4  ;;  %2200 = vmatprep.subr.bf16.mxu1 %v2475_v8 }
 0x4e6   :  { %v1715_v6 = vpop.xlane.xlu1 %1714 }
 0x4e7   :  { %v1733_v10 = vadd.f32 %v2835_v5, %v1715_v6 }
 0x4e9   :  { %1742 = vst.msk [vmem:[%s3121_s4 + $0x6] sm:$0x3] %vm1738_vm1, %v1733_v10 }
 0x521   :  { %v948_v11 = vpop.f32.mrb[8].mxu0  ;;  %v1019_v14 = vpop.f32.mrb[8].mxu1 }
 0x522   :  { %v950_v15 = vpop.f32.mrb[9].mxu0  ;;  %v1021_v21 = vpop.f32.mrb[9].mxu1 }
 0x523   :  { %v1028_v54 = vcombine.low %v948_v11, %v950_v15  ;;  %v1029_v23 = vcombine.low %v1019_v14, %v1021_v21 }
 0x525   :  { %v1036_v24 = vrot.slane %v1028_v54, %v2781_v58  ;;  %v1043_v28 = vrot.slane %v1029_v23, %v2781_v58 }
 0x527   :  { %v1044_v30 = vcombine.low %v1036_v24, %v1043_v28 }
 0x529   :  { %v1046_v33 = vadd.f32 %v1766_v29, %v1044_v30 }
 0x52b   :  { %v1767_v38 = vmul.f32 -1.442695, %v1046_v33  ;;  %v1054_v41 = vrot.slane %v1046_v33, 2  ;;  %v1065_v43 = vrot.slane %v1046_v33, 6  ;;  %v1062_v49 = vrot.slane %v1046_v33, 4 }
 0x52d   :  { %2361 = vpow2.f32 %v1767_v38  ;;  %v1768_v12 = vmul.f32 -1.442695, %v1054_v41  ;;  %v1769_v45 = vmul.f32 -1.442695, %v1065_v43 }
 0x52f   :  { %2363 = vpow2.f32 %v1768_v12 }
 0x530   :  { %2365 = vpow2.f32 %v1769_v45 }
 0x537   :  { %v2362_v48 = vpop.eup %2361 }
 0x538   :  { %v1050_v50 = vadd.f32 1.0, %v2362_v48 }
 0x539   :  { %v2364_v56 = vpop.eup %2363 }
 0x53a   :  { %2367 = vrcp.f32 %v1050_v50  ;;  %v1059_v59 = vadd.f32 1.0, %v2364_v56  ;;  %v2366_v61 = vpop.eup %2365 }
 0x53b   :  { %2369 = vtanh.f32 %v1062_v49  ;;  %v1070_v6 = vadd.f32 1.0, %v2366_v61 }
 0x53c   :  { %2371 = vrcp.f32 %v1059_v59 }
 0x53d   :  { %2373 = vrcp.f32 %v1070_v6 }
 0x544   :  { %v2368_v32 = vpop.eup %2367 }
 0x545   :  { %v2370_v62 = vpop.eup %2369 }
 0x546   :  { %v2372_v2 = vpop.eup %2371  ;;  %v1074_v11 = vmul.f32 %v2370_v62, %v2368_v32 }
 0x547   :  { %v1073_v10 = vmul.f32 %v2372_v2, %v2948_v55  ;;  %v2374_v15 = vpop.eup %2373 }
 0x549   :  { %v2998_v14 = vadd.f32 %v1074_v11, %v1073_v10 }
 0x54b   :  { %2375 = vtanh.f32 %v2998_v14 }
 0x555   :  { %v2376_v21 = vpop.eup %2375 }
 0x556   :  { %v1077_v54 = vmul.f32 %v2376_v21, %v2374_v15 }
 0x558   :  { %1079 = vst [vmem:[#allocation2 + $0x8] sm:$0x3] %v1077_v54  ;;  %1147 = vmatmul.mubr.f32.vlgmr.msra.gmra.mrb[10].mxu0 %v1077_v54  ;;  %1218 = vmatmul.mubr.f32.vlgmr.msra.gmra.mrb[10].mxu1 %v1077_v54 }
 0x559   :  { %2170 = vmatpush1.bf16.msra.mxu0 %v2477_v9  ;;  %2202 = vmatpush1.bf16.msra.mxu1 %v2489_v13 }
 0x55a   :  { %2172 = vmatprep.subr.bf16.mxu0 %v2502_v17  ;;  %2204 = vmatprep.subr.bf16.mxu1 %v2504_v18 }
 0x55b   :  { %1346 = vmatprep.mubr.f32.mxu0 %v2426_v3  ;;  %1417 = vmatprep.mubr.f32.mxu1 %v2426_v3 }
 0x55d   :  { %2174 = vmatpush1.bf16.msra.mxu0 %v2516_v22  ;;  %2206 = vmatpush1.bf16.msra.mxu1 %v2529_v26 }
 0x55e   :  { %2176 = vmatprep.subr.bf16.mxu0 %v2531_v27  ;;  %2208 = vmatprep.subr.bf16.mxu1 %v2542_v31 }
 0x55f   :  { %v1684_v55 = vld [vmem:[#allocation2 + $0x8] sm:$0x3] }
 0x560   :  { %v1699_v23 = vmul.f32 %v2800_v60, %v1684_v55 }
 0x561   :  { %2178 = vmatpush1.bf16.msra.mxu0 %v2554_v35  ;;  %2210 = vmatpush1.bf16.msra.mxu1 %v2567_v39 }
 0x562   :  { %v1716_v24 = vsel %vm1703_vm0, %v1699_v23, 0.0  ;;  %2180 = vmatprep.subr.bf16.mxu0 %v2569_v40  ;;  %2212 = vmatprep.subr.bf16.mxu1 %v2581_v44 }
 0x563   :  { %1717 = vadd.xlane.f32.xlu0 %v1716_v24 }
 0x565   :  { %2182 = vmatpush1.bf16.msra.mxu0 %v2602_v51  ;;  %2214 = vmatpush1.bf16.msra.mxu1 %v2606_v52 }
 0x566   :  { %2184 = vmatprep.subr.bf16.mxu0 %v2608_v53  ;;  %2216 = vmatprep.subr.bf16.mxu1 %v2620_v57 }
 0x569   :  { %2186 = vmatpush1.bf16.msra.mxu0 %v2638_v63  ;;  %2218 = vmatpush1.bf16.msra.mxu1 %v2642_v0 }
 0x56a   :  { %2188 = vmatprep.subr.bf16.mxu0 %v2644_v1  ;;  %2220 = vmatprep.subr.bf16.mxu1 %v2656_v7 }
 0x56d   :  { %2190 = vmatpush1.bf16.msra.mxu0 %v2674_v16  ;;  %2222 = vmatpush1.bf16.msra.mxu1 %v2678_v19 }
 0x56e   :  { %2192 = vmatprep.subr.bf16.mxu0 %v2680_v20  ;;  %2224 = vmatprep.subr.bf16.mxu1 %v2692_v25 }
 0x571   :  { %2194 = vmatpush1.bf16.msra.mxu0 %v2710_v34  ;;  %2226 = vmatpush1.bf16.msra.mxu1 %v2714_v36 }
 0x572   :  { %2196 = vmatprep.subr.bf16.mxu0 %v2716_v37  ;;  %2228 = vmatprep.subr.bf16.mxu1 %v2725_v42 }
 0x575   :  { %2198 = vmatpush1.bf16.msra.mxu0 %v2734_v46  ;;  %2230 = vmatpush1.bf16.msra.mxu1 %v2738_v47 }
 0x576   :  { %2232 = vmatprep.subr.bf16.mxu0 %v2464_v4  ;;  %2264 = vmatprep.subr.bf16.mxu1 %v2475_v8  ;;  %v1770_v8 = vld [vmem:[%s3118_s0 + $0x28] sm:$0xff] }
 0x5f0   :  { %v1718_v28 = vpop.xlane.xlu0 %1717 }
 0x5f1   :  { %v1734_v29 = vadd.f32 %v2835_v5, %v1718_v28 }
 0x5f3   :  { %1743 = vst.msk [vmem:[%s3121_s4 + $0x8] sm:$0x3] %vm1738_vm1, %v1734_v29 }
 0x62b   :  { %v1148_v30 = vpop.f32.mrb[10].mxu0  ;;  %v1219_v33 = vpop.f32.mrb[10].mxu1 }
 0x62c   :  { %v1150_v38 = vpop.f32.mrb[11].mxu0  ;;  %v1221_v41 = vpop.f32.mrb[11].mxu1 }
 0x62d   :  { %v1228_v12 = vcombine.low %v1148_v30, %v1150_v38  ;;  %v1229_v43 = vcombine.low %v1219_v33, %v1221_v41 }
 0x62f   :  { %v1236_v45 = vrot.slane %v1228_v12, %v2781_v58  ;;  %v1243_v4 = vrot.slane %v1229_v43, %v2781_v58 }
 0x631   :  { %v1244_v48 = vcombine.low %v1236_v45, %v1243_v4 }
 0x633   :  { %v1246_v49 = vadd.f32 %v1770_v8, %v1244_v48 }
 0x635   :  { %v1771_v50 = vmul.f32 -1.442695, %v1246_v49  ;;  %v1254_v56 = vrot.slane %v1246_v49, 2  ;;  %v1265_v61 = vrot.slane %v1246_v49, 6  ;;  %v1262_v2 = vrot.slane %v1246_v49, 4 }
 0x637   :  { %2377 = vpow2.f32 %v1771_v50  ;;  %v1772_v59 = vmul.f32 -1.442695, %v1254_v56  ;;  %v1773_v32 = vmul.f32 -1.442695, %v1265_v61 }
 0x639   :  { %2379 = vpow2.f32 %v1772_v59 }
 0x63a   :  { %2381 = vpow2.f32 %v1773_v32 }
 0x641   :  { %v2378_v62 = vpop.eup %2377 }
 0x642   :  { %v1250_v6 = vadd.f32 1.0, %v2378_v62 }
 0x643   :  { %v2380_v10 = vpop.eup %2379 }
 0x644   :  { %2383 = vrcp.f32 %v1250_v6  ;;  %v1259_v11 = vadd.f32 1.0, %v2380_v10  ;;  %v2382_v15 = vpop.eup %2381 }
 0x645   :  { %2385 = vtanh.f32 %v1262_v2  ;;  %v1270_v23 = vadd.f32 1.0, %v2382_v15 }
 0x646   :  { %2387 = vrcp.f32 %v1259_v11  ;;  %v1778_v11 = vld [vmem:[%s3118_s0 + $0x38] sm:$0xff] }
 0x647   :  { %2389 = vrcp.f32 %v1270_v23 }
 0x64e   :  { %v2384_v21 = vpop.eup %2383 }
 0x64f   :  { %v2386_v54 = vpop.eup %2385 }
 0x650   :  { %v2388_v55 = vpop.eup %2387  ;;  %v1274_v28 = vmul.f32 %v2386_v54, %v2384_v21 }
 0x651   :  { %v1273_v24 = vmul.f32 %v2388_v55, %v2998_v14  ;;  %v2390_v30 = vpop.eup %2389 }
 0x653   :  { %v3048_v29 = vadd.f32 %v1274_v28, %v1273_v24 }
 0x655   :  { %2391 = vtanh.f32 %v3048_v29 }
 0x65f   :  { %v2392_v33 = vpop.eup %2391 }
 0x660   :  { %v1277_v38 = vmul.f32 %v2392_v33, %v2390_v30 }
 0x662   :  { %1279 = vst [vmem:[#allocation2 + $0xa] sm:$0x3] %v1277_v38  ;;  %1347 = vmatmul.mubr.f32.vlgmr.msra.gmra.mrb[12].mxu0 %v1277_v38  ;;  %1418 = vmatmul.mubr.f32.vlgmr.msra.gmra.mrb[12].mxu1 %v1277_v38 }
 0x663   :  { %2234 = vmatpush1.bf16.msra.mxu0 %v2477_v9  ;;  %2266 = vmatpush1.bf16.msra.mxu1 %v2489_v13 }
 0x664   :  { %2236 = vmatprep.subr.bf16.mxu0 %v2502_v17  ;;  %2268 = vmatprep.subr.bf16.mxu1 %v2504_v18 }
 0x665   :  { %1546 = vmatprep.mubr.f32.mxu0 %v2426_v3  ;;  %1617 = vmatprep.mubr.f32.mxu1 %v2426_v3 }
 0x667   :  { %2238 = vmatpush1.bf16.msra.mxu0 %v2516_v22  ;;  %2270 = vmatpush1.bf16.msra.mxu1 %v2529_v26 }
 0x668   :  { %2240 = vmatprep.subr.bf16.mxu0 %v2531_v27  ;;  %2272 = vmatprep.subr.bf16.mxu1 %v2542_v31 }
 0x669   :  { %v1685_v14 = vld [vmem:[#allocation2 + $0xa] sm:$0x3] }
 0x66a   :  { %v1700_v9 = vmul.f32 %v2800_v60, %v1685_v14 }
 0x66b   :  { %2242 = vmatpush1.bf16.msra.mxu0 %v2554_v35  ;;  %2274 = vmatpush1.bf16.msra.mxu1 %v2567_v39 }
 0x66c   :  { %v1719_v13 = vsel %vm1703_vm0, %v1700_v9, 0.0  ;;  %2244 = vmatprep.subr.bf16.mxu0 %v2569_v40  ;;  %2276 = vmatprep.subr.bf16.mxu1 %v2581_v44  ;;  %v1774_v44 = vld [vmem:[%s3118_s0 + $0x30] sm:$0xff] }
 0x66d   :  { %1720 = vadd.xlane.f32.xlu1 %v1719_v13 }
 0x66f   :  { %2246 = vmatpush1.bf16.msra.mxu0 %v2602_v51  ;;  %2278 = vmatpush1.bf16.msra.mxu1 %v2606_v52 }
 0x670   :  { %2248 = vmatprep.subr.bf16.mxu0 %v2608_v53  ;;  %2280 = vmatprep.subr.bf16.mxu1 %v2620_v57 }
 0x673   :  { %2250 = vmatpush1.bf16.msra.mxu0 %v2638_v63  ;;  %2282 = vmatpush1.bf16.msra.mxu1 %v2642_v0 }
 0x674   :  { %2252 = vmatprep.subr.bf16.mxu0 %v2644_v1  ;;  %2284 = vmatprep.subr.bf16.mxu1 %v2656_v7 }
 0x677   :  { %2254 = vmatpush1.bf16.msra.mxu0 %v2674_v16  ;;  %2286 = vmatpush1.bf16.msra.mxu1 %v2678_v19 }
 0x678   :  { %2256 = vmatprep.subr.bf16.mxu0 %v2680_v20  ;;  %2288 = vmatprep.subr.bf16.mxu1 %v2692_v25 }
 0x67b   :  { %2258 = vmatpush1.bf16.msra.mxu0 %v2710_v34  ;;  %2290 = vmatpush1.bf16.msra.mxu1 %v2714_v36 }
 0x67c   :  { %2260 = vmatprep.subr.bf16.mxu0 %v2716_v37  ;;  %2292 = vmatprep.subr.bf16.mxu1 %v2725_v42 }
 0x67f   :  { %2262 = vmatpush1.bf16.msra.mxu0 %v2734_v46  ;;  %2294 = vmatpush1.bf16.msra.mxu1 %v2738_v47 }
 0x6fa   :  { %v1721_v3 = vpop.xlane.xlu1 %1720 }
 0x6fb   :  { %v1735_v17 = vadd.f32 %v2835_v5, %v1721_v3 }
 0x6fd   :  { %1744 = vst.msk [vmem:[%s3121_s4 + $0xa] sm:$0x3] %vm1738_vm1, %v1735_v17 }
 0x735   :  { %v1348_v18 = vpop.f32.mrb[12].mxu0  ;;  %v1419_v22 = vpop.f32.mrb[12].mxu1 }
 0x736   :  { %v1350_v26 = vpop.f32.mrb[13].mxu0  ;;  %v1421_v27 = vpop.f32.mrb[13].mxu1 }
 0x737   :  { %v1428_v31 = vcombine.low %v1348_v18, %v1350_v26  ;;  %v1429_v35 = vcombine.low %v1419_v22, %v1421_v27 }
 0x739   :  { %v1436_v39 = vrot.slane %v1428_v31, %v2781_v58  ;;  %v1443_v40 = vrot.slane %v1429_v35, %v2781_v58 }
 0x73b   :  { %v1444_v51 = vcombine.low %v1436_v39, %v1443_v40  ;;  %v2425_v40 = vld [vmem:[%s3119_s2] ss:$0 sm:$0xff] }
 0x73d   :  { %v1446_v52 = vadd.f32 %v1774_v44, %v1444_v51 }
 0x73f   :  { %v1775_v53 = vmul.f32 -1.442695, %v1446_v52  ;;  %v1454_v57 = vrot.slane %v1446_v52, 2  ;;  %v1465_v0 = vrot.slane %v1446_v52, 6  ;;  %v1462_v16 = vrot.slane %v1446_v52, 4 }
 0x741   :  { %2393 = vpow2.f32 %v1775_v53  ;;  %v1776_v63 = vmul.f32 -1.442695, %v1454_v57  ;;  %v1777_v1 = vmul.f32 -1.442695, %v1465_v0 }
 0x743   :  { %2395 = vpow2.f32 %v1776_v63 }
 0x744   :  { %2397 = vpow2.f32 %v1777_v1 }
 0x74b   :  { %v2394_v7 = vpop.eup %2393 }
 0x74c   :  { %v1450_v19 = vadd.f32 1.0, %v2394_v7 }
 0x74d   :  { %v2396_v20 = vpop.eup %2395 }
 0x74e   :  { %2399 = vrcp.f32 %v1450_v19  ;;  %v1459_v25 = vadd.f32 1.0, %v2396_v20  ;;  %v2398_v34 = vpop.eup %2397 }
 0x74f   :  { %2401 = vtanh.f32 %v1462_v16  ;;  %v1470_v46 = vadd.f32 1.0, %v2398_v34 }
 0x750   :  { %2403 = vrcp.f32 %v1459_v25 }
 0x751   :  { %2405 = vrcp.f32 %v1470_v46 }
 0x758   :  { %v2400_v36 = vpop.eup %2399 }
 0x759   :  { %v2402_v37 = vpop.eup %2401 }
 0x75a   :  { %v2404_v42 = vpop.eup %2403  ;;  %v1474_v41 = vmul.f32 %v2402_v37, %v2400_v36 }
 0x75b   :  { %v1473_v47 = vmul.f32 %v2404_v42, %v3048_v29  ;;  %v2406_v43 = vpop.eup %2405 }
 0x75d   :  { %v1475_v12 = vadd.f32 %v1474_v41, %v1473_v47 }
 0x75f   :  { %2407 = vtanh.f32 %v1475_v12 }
 0x769   :  { %v2408_v45 = vpop.eup %2407 }
 0x76a   :  { %v1477_v4 = vmul.f32 %v2408_v45, %v2406_v43 }
 0x76c   :  { %1479 = vst [vmem:[#allocation2 + $0xc] sm:$0x3] %v1477_v4  ;;  %1547 = vmatmul.mubr.f32.vlgmr.msra.gmra.mrb[14].mxu0 %v1477_v4  ;;  %1618 = vmatmul.mubr.f32.vlgmr.msra.gmra.mrb[14].mxu1 %v1477_v4 }
 0x773   :  { %v1686_v8 = vld [vmem:[#allocation2 + $0xc] sm:$0x3] }
 0x774   :  { %v1701_v48 = vmul.f32 %v2800_v60, %v1686_v8 }
 0x776   :  { %v1722_v49 = vsel %vm1703_vm0, %v1701_v48, 0.0 }
 0x777   :  { %1723 = vadd.xlane.f32.xlu0 %v1722_v49 }
 0x804   :  { %v1724_v50 = vpop.xlane.xlu0 %1723 }
 0x805   :  { %v1736_v56 = vadd.f32 %v2835_v5, %v1724_v50 }
 0x807   :  { %1745 = vst.msk [vmem:[%s3121_s4 + $0xc] sm:$0x3] %vm1738_vm1, %v1736_v56 }
 0x83f   :  { %v1548_v59 = vpop.f32.mrb[14].mxu0  ;;  %v1619_v61 = vpop.f32.mrb[14].mxu1 }
 0x840   :  { %v1550_v32 = vpop.f32.mrb[15].mxu0  ;;  %v1621_v62 = vpop.f32.mrb[15].mxu1 }
 0x841   :  { %v1628_v2 = vcombine.low %v1548_v59, %v1550_v32  ;;  %v1629_v6 = vcombine.low %v1619_v61, %v1621_v62 }
 0x843   :  { %v1636_v10 = vrot.slane %v1628_v2, %v2781_v58  ;;  %v1643_v60 = vrot.slane %v1629_v6, %v2781_v58 }
 0x845   :  { %v1644_v15 = vcombine.low %v1636_v10, %v1643_v60 }
 0x847   :  { %v1646_v21 = vadd.f32 %v1778_v11, %v1644_v15 }
 0x849   :  { %v1779_v54 = vmul.f32 -1.442695, %v1646_v21  ;;  %v1654_v55 = vrot.slane %v1646_v21, 2  ;;  %v1665_v24 = vrot.slane %v1646_v21, 6  ;;  %v1662_v30 = vrot.slane %v1646_v21, 4 }
 0x84b   :  { %2409 = vpow2.f32 %v1779_v54  ;;  %v1780_v23 = vmul.f32 -1.442695, %v1654_v55  ;;  %v1781_v28 = vmul.f32 -1.442695, %v1665_v24 }
 0x84d   :  { %2411 = vpow2.f32 %v1780_v23 }
 0x84e   :  { %2413 = vpow2.f32 %v1781_v28 }
 0x855   :  { %v2410_v29 = vpop.eup %2409 }
 0x856   :  { %v1650_v33 = vadd.f32 1.0, %v2410_v29 }
 0x857   :  { %v2412_v38 = vpop.eup %2411 }
 0x858   :  { %2415 = vrcp.f32 %v1650_v33  ;;  %v1659_v58 = vadd.f32 1.0, %v2412_v38  ;;  %v2414_v14 = vpop.eup %2413 }
 0x859   :  { %2417 = vtanh.f32 %v1662_v30  ;;  %v1670_v17 = vadd.f32 1.0, %v2414_v14 }
 0x85a   :  { %2419 = vrcp.f32 %v1659_v58 }
 0x85b   :  { %2421 = vrcp.f32 %v1670_v17 }
 0x862   :  { %v2416_v9 = vpop.eup %2415 }
 0x863   :  { %v2418_v13 = vpop.eup %2417 }
 0x864   :  { %v2420_v3 = vpop.eup %2419  ;;  %v1674_v22 = vmul.f32 %v2418_v13, %v2416_v9 }
 0x865   :  { %v1673_v18 = vmul.f32 %v2420_v3, %v1475_v12  ;;  %v2422_v27 = vpop.eup %2421 }
 0x867   :  { %v1675_v26 = vadd.f32 %v1674_v22, %v1673_v18 }
 0x869   :  { %2423 = vtanh.f32 %v1675_v26 }
 0x873   :  { %v2424_v31 = vpop.eup %2423 }
 0x874   :  { %v1677_v35 = vmul.f32 %v2424_v31, %v2422_v27 }
 0x876   :  { %1679 = vst [vmem:[#allocation2 + $0xe] sm:$0x3] %v1677_v35 }
 0x87d   :  { %v1687_v39 = vld [vmem:[#allocation2 + $0xe] sm:$0x3] }
 0x87e   :  { %v1702_v44 = vmul.f32 %v2425_v40, %v1687_v39 }
 0x880   :  { %v1725_v51 = vsel %vm1703_vm0, %v1702_v44, 0.0 }
 0x881   :  { %1726 = vadd.xlane.f32.xlu1 %v1725_v51 }
 0x90e   :  { %v1727_v52 = vpop.xlane.xlu1 %1726 }
 0x90f   :  { %v1737_v53 = vadd.f32 %v2835_v5, %v1727_v52 }
 0x911   :  { %1746 = vst.msk [vmem:[%s3121_s4 + $0xe] sm:$0x3] %vm1738_vm1, %v1737_v53 }

</bundles_post_ra>
